<compile_context>
chip_gen: v6e
topology: v6e:2x2x1
jax: 0.10.0
libtpu: 0.0.40
codegen_flags: <defaults>
</compile_context>

<pallas_src>
import functools

import numpy as np
import jax
import jax.numpy as jnp
from jax import lax
from jax.experimental import pallas as pl
from jax.experimental.pallas import tpu as pltpu

LN_EPS = 1e-5                 # torch.nn.LayerNorm default
MATMUL_DTYPE = jnp.bfloat16   # MXU operand dtype (accumulation stays f32)


def _layernorm(x, g, b):
    mu = jnp.mean(x, axis=-1, keepdims=True)
    var = jnp.mean((x - mu) ** 2, axis=-1, keepdims=True)
    return (x - mu) * lax.rsqrt(var + LN_EPS) * g + b


def _swin_block_kernel(x_ref, rollm_ref, g1_ref, b1_ref,
                       wq_ref, bq_ref, wk_ref, bk_ref, wv_ref, bv_ref,
                       wp_ref, bp_ref, g2_ref, b2_ref,
                       w1_ref, bb1_ref, w2_ref, bb2_ref,
                       sel_ref, rsum_ref, gexp_ref, gsum_ref,
                       pexp_ref, osum_ref, gmask_ref, rowmap_ref,
                       out_ref, *, num_heads, head_dim, tokens, shift):
    f32 = jnp.float32
    mmdt = MATMUL_DTYPE
    H, hd, N = num_heads, head_dim, tokens
    C = H * hd
    R = x_ref.shape[0]                 # Bt * N flattened rows in this block

    # ---- load; cast AFTER the DMA (HBM keeps its native dtype) ---------------
    x = x_ref[...].astype(f32)                                      # (R, C)

    # ---- torch.roll(x, -shift, dims=token) per batch group of N rows ---------
    # Two whole-tile sublane-shifted copies + a hoisted 0/1 row-select: no MXU
    # permutation matmul and no per-iteration iota constants.
    if shift:
        def _row_shift(a, k):          # out[r] = a[(r + k) % R]
            return jnp.concatenate([a[k:, :], a[:k, :]], axis=0)
        a_roll = _row_shift(x, shift)                 # valid where r%N <  N-shift
        b_roll = _row_shift(x, (shift - N) % R)       # valid where r%N >= N-shift
        msk = rollm_ref[...]                          # (R, 1) f32 0/1
        x = msk * a_roll + (1.0 - msk) * b_roll

    # ---- norm1 ----------------------------------------------------------------
    xn = _layernorm(x, g1_ref[...], b1_ref[...])                    # (R, C) f32
    xb = xn.astype(mmdt)

    # ---- qkv projection (softmax scale pre-folded into wq/bq on the host) ----
    q = jnp.dot(xb, wq_ref[...], preferred_element_type=f32) + bq_ref[...]
    k = jnp.dot(xb, wk_ref[...], preferred_element_type=f32) + bk_ref[...]
    v = jnp.dot(xb, wv_ref[...], preferred_element_type=f32) + bv_ref[...]

    # ---- per-token attention over the HEAD axis, all heads & rows at once ----
    # q_rep[r, h*C + g*hd + d] = q[r, h*hd + d]
    q_rep = jnp.dot(q.astype(mmdt), sel_ref[...], preferred_element_type=f32)
    k_tile = jnp.concatenate([k] * H, axis=1)                       # (R, H*C)
    # s_all[r, h*H + g] = <q_h(r), k_g(r)>   (already scaled)
    s_all = jnp.dot(q_rep * k_tile, rsum_ref[...], preferred_element_type=f32)

    # group softmax over each run of H key-head columns
    m_grp = jnp.concatenate(
        [jnp.max(s_all[:, h * H:(h + 1) * H], axis=-1, keepdims=True)
         for h in range(H)], axis=1)                                # (R, H)
    m_full = jnp.dot(m_grp, gexp_ref[...], preferred_element_type=f32)
    e = jnp.exp(s_all - m_full)
    den = jnp.dot(e, gsum_ref[...], preferred_element_type=f32)     # (R, H)
    inv = pl.reciprocal(den, approx=True)
    p = e * jnp.dot(inv, gexp_ref[...], preferred_element_type=f32)  # (R, H*H)

    # attn @ v:  o[r, h*hd + d] = sum_g p[r, h*H + g] * v[r, g*hd + d]
    p_exp = jnp.dot(p.astype(mmdt), pexp_ref[...], preferred_element_type=f32)
    v_tile = jnp.concatenate([v] * H, axis=1)                       # (R, H*C)
    o_hd = jnp.dot((p_exp * v_tile).astype(mmdt), osum_ref[...],
                   preferred_element_type=f32)                      # (R, C) head-major

    # (attn@v).transpose(1,2).reshape(B,N,C) shuffle: per source head h, tile
    # its hd slice across the C lanes, keep the column block (r % H), stack the
    # H slabs along rows and regroup with ONE block-structured 0/1 matmul.
    gmask = gmask_ref[...]                                          # (R, C) 0/1
    stacked = jnp.concatenate(
        [jnp.concatenate([o_hd[:, h * hd:(h + 1) * hd]] * H, axis=1) * gmask
         for h in range(H)], axis=0)                                # (H*R, C)
    shuf = jnp.dot(rowmap_ref[...], stacked.astype(mmdt),
                   preferred_element_type=f32)                      # (R, C)

    # ---- output projection + residual with the *normed* input (reference) ----
    y = jnp.dot(shuf.astype(mmdt), wp_ref[...],
                preferred_element_type=f32) + bp_ref[...] + xn

    # ---- norm2 + MLP (Linear, exact-erf GELU, Linear) + residual --------------
    yn = _layernorm(y, g2_ref[...], b2_ref[...])
    h1 = jnp.dot(yn.astype(mmdt), w1_ref[...],
                 preferred_element_type=f32) + bb1_ref[...]
    h1 = 0.5 * h1 * (1.0 + lax.erf(h1 * 0.7071067811865476))
    o = jnp.dot(h1.astype(mmdt), w2_ref[...],
                preferred_element_type=f32) + bb2_ref[...]
    out_ref[...] = (o + yn).astype(out_ref.dtype)


# ---------------------------------------------------------------------------
# Host-side (one-time) preparation: weight splits/casts, scale folding, and all
# 0/1 attention / shuffle constants.
# ---------------------------------------------------------------------------
def _pick_bt(B, N, target_rows=256, max_rows=512):
    """Largest divisor of B whose row tile stays <= max_rows, stopping once the
    MXU-friendly target (>=256 rows on v6e/v7x, >=128 on v5e) is reached."""
    best = 1
    for bt in range(1, B + 1):
        if B % bt:
            continue
        if bt * N <= max_rows:
            best = bt
        if bt * N >= target_rows:
            break
    return best


def _attn_constants(N, C, H, R, shift):
    hd = C // H
    rph = N // H
    f32 = np.float32

    c = np.arange(C)
    j = np.arange(H * C)
    m = np.arange(H * H)
    h = np.arange(H)
    r = np.arange(R)

    # q replication: q_rep[r, h*C+g*hd+d] = q[r, h*hd+d]
    sel = (c[:, None] == (j[None, :] // C) * hd + (j[None, :] % hd)).astype(f32)
    # score sum over d:   s[r, h*H+g] = sum_d (q_rep*k_tile)[r, h*C+g*hd+d]
    rsum = (m[None, :] == (j[:, None] // C) * H
            + ((j[:, None] % C) // hd)).astype(f32)
    # per-group broadcast / sum for the softmax over the key-head axis
    gexp = (m[None, :] // H == h[:, None]).astype(f32)              # (H, H*H)
    gsum = gexp.T.copy()                                            # (H*H, H)
    # prob expansion: p_exp[r, h*C+g*hd+d] = p[r, h*H+g]
    pexp = ((j[None, :] // C == m[:, None] // H) &
            ((j[None, :] % C) // hd == m[:, None] % H)).astype(f32)
    # attn@v sum over g, head-major output: o[r, h*hd+d]
    osum = ((j[:, None] // C == c[None, :] // hd) &
            (j[:, None] % hd == c[None, :] % hd)).astype(f32)
    # shuffle: keep column block g == r % H
    gmask = ((c[None, :] // hd) == (r[:, None] % H)).astype(f32)    # (R, C)
    # shuffle row regroup (block-diagonal per batch), one wide constant:
    # column sigma = h*R + r_src ; dest row rho gets it iff same batch and
    # (rho % N) == h*rph + (r_src % N)//H
    sig = np.arange(H * R)
    h_src = sig[None, :] // R
    r_src = sig[None, :] % R
    rho = r[:, None]
    rowmap = (((rho // N) == (r_src // N)) &
              ((rho % N) == h_src * rph + (r_src % N) // H)).astype(f32)
    # roll select: rows with (r % N) < N - shift take the "+shift" copy
    if shift:
        rollmask = ((r % N) < (N - shift)).astype(f32)[:, None]
    else:
        rollmask = np.ones((R, 1), f32)
    return sel, rsum, gexp, gsum, pexp, osum, gmask, rowmap, rollmask


def prepare(params, *, num_heads, shift_size, batch, tokens,
            target_rows=256, max_rows=512):
    """One-time prep: split/cast weights, fold the softmax scale, build the
    hoisted attention/shuffle constants (all outside the per-call path)."""
    C = int(params["wqkv"].shape[0])
    H = int(num_heads)
    assert C % H == 0, "num_heads must divide C"
    hd = C // H
    N = int(tokens)
    assert N % H == 0, "fused shuffle assumes num_heads divides the token count"
    B = int(batch)
    Bt = _pick_bt(B, N, target_rows, max_rows)
    R = Bt * N
    s = shift_size % N if shift_size > 0 else 0
    scale = float(hd) ** (-0.5)
    mmdt = MATMUL_DTYPE

    wqkv = np.asarray(params["wqkv"], np.float32)
    bqkv = np.asarray(params["bqkv"], np.float32)
    sel, rsum, gexp, gsum, pexp, osum, gmask, rowmap, rollmask = \
        _attn_constants(N, C, H, R, s)

    args = (
        jnp.asarray(rollmask, jnp.float32),
        jnp.asarray(params["g1"], jnp.float32),
        jnp.asarray(params["b1"], jnp.float32),
        jnp.asarray(wqkv[:, :C] * scale, mmdt),        # scale folded into q
        jnp.asarray(bqkv[:, :C] * scale, jnp.float32),
        jnp.asarray(wqkv[:, C:2 * C], mmdt),
        jnp.asarray(bqkv[:, C:2 * C], jnp.float32),
        jnp.asarray(wqkv[:, 2 * C:], mmdt),
        jnp.asarray(bqkv[:, 2 * C:], jnp.float32),
        jnp.asarray(params["wproj"], mmdt),
        jnp.asarray(params["bproj"], jnp.float32),
        jnp.asarray(params["g2"], jnp.float32),
        jnp.asarray(params["b2"], jnp.float32),
        jnp.asarray(params["w1"], mmdt),
        jnp.asarray(params["bb1"], jnp.float32),
        jnp.asarray(params["w2"], mmdt),
        jnp.asarray(params["bb2"], jnp.float32),
        jnp.asarray(sel, mmdt),
        jnp.asarray(rsum, jnp.float32),     # score path stays f32 for accuracy
        jnp.asarray(gexp, jnp.float32),
        jnp.asarray(gsum, jnp.float32),
        jnp.asarray(pexp, mmdt),
        jnp.asarray(osum, mmdt),
        jnp.asarray(gmask, jnp.float32),
        jnp.asarray(rowmap, mmdt),
    )
    cfg = dict(B=B, N=N, C=C, H=H, hd=hd, R=R, Bt=Bt, shift=s)
    return {"args": args, "cfg": cfg}


def swin_block_forward(x, prep):
    cfg, args = prep["cfg"], prep["args"]
    B, N, C = x.shape
    assert (B, N, C) == (cfg["B"], cfg["N"], cfg["C"]), "prepare() config mismatch"
    R = cfg["R"]

    kernel = functools.partial(
        _swin_block_kernel, num_heads=cfg["H"], head_dim=cfg["hd"],
        tokens=N, shift=cfg["shift"])

    def _const_spec(a):
        return pl.BlockSpec(a.shape, lambda i, _n=a.ndim: (0,) * _n)

    xf = x.reshape(B * N, C)                      # free row-major view
    out = pl.pallas_call(
        kernel,
        grid=(B * N // R,),
        in_specs=[pl.BlockSpec((R, C), lambda i: (i, 0))]
                 + [_const_spec(a) for a in args],
        out_specs=pl.BlockSpec((R, C), lambda i: (i, 0)),
        out_shape=jax.ShapeDtypeStruct((B * N, C), jnp.float32),
        compiler_params=pltpu.CompilerParams(
            dimension_semantics=("parallel",),
            vmem_limit_bytes=32 * 1024 * 1024),
    )(xf, *args)
    return out.reshape(B, N, C)


# ---------------------------------------------------------------------------
# Pure-JAX f32 reference (direct translation of the PyTorch module) + params.
# ---------------------------------------------------------------------------
def swin_block_reference(x, params, *, num_heads, shift_size):
    B, N, C = x.shape
    hd = C // num_heads
    scale = hd ** (-0.5)

    def ln(v, g, b):
        mu = v.mean(-1, keepdims=True)
        var = ((v - mu) ** 2).mean(-1, keepdims=True)
        return (v - mu) * jax.lax.rsqrt(var + LN_EPS) * g + b

    if shift_size > 0:
        x = jnp.roll(x, -shift_size, axis=1)
    xn = ln(x, params["g1"], params["b1"])
    qkv = (xn @ params["wqkv"] + params["bqkv"]).reshape(B, N, 3, num_heads, hd)
    q, k, v = qkv[:, :, 0], qkv[:, :, 1], qkv[:, :, 2]
    attn = jnp.einsum("bnhd,bngd->bnhg", q, k) * scale
    attn = jax.nn.softmax(attn, axis=-1)
    o = jnp.einsum("bnhg,bngd->bnhd", attn, v)
    o = jnp.transpose(o, (0, 2, 1, 3)).reshape(B, N, C)
    y = o @ params["wproj"] + params["bproj"] + xn
    yn = ln(y, params["g2"], params["b2"])
    h = yn @ params["w1"] + params["bb1"]
    h = 0.5 * h * (1.0 + jax.lax.erf(h / jnp.sqrt(2.0)))
    return h @ params["w2"] + params["bb2"] + yn


def init_params(key, dim, num_heads, mlp_ratio=4.0):
    hidden = int(dim * mlp_ratio)
    ks = jax.random.split(key, 8)
    std = 0.02

    def w(k, shape):
        return (std * jax.random.normal(k, shape)).astype(jnp.float32)

    return {
        "g1": jnp.ones((1, dim), jnp.float32),
        "b1": jnp.zeros((1, dim), jnp.float32),
        "wqkv": w(ks[0], (dim, 3 * dim)),      # columns laid out as [3, H, hd]
        "bqkv": w(ks[1], (1, 3 * dim)),
        "wproj": w(ks[2], (dim, dim)),
        "bproj": w(ks[3], (1, dim)),
        "g2": jnp.ones((1, dim), jnp.float32),
        "b2": jnp.zeros((1, dim), jnp.float32),
        "w1": w(ks[4], (dim, hidden)),
        "bb1": w(ks[5], (1, hidden)),
        "w2": w(ks[6], (hidden, dim)),
        "bb2": w(ks[7], (1, dim)),
    }


if __name__ == "__main__":
    def _check(B, N, C, H, shift, mlp_ratio=4.0, tol=3e-2):
        key = jax.random.PRNGKey(0)
        kx, kp = jax.random.split(key)
        x = jax.random.normal(kx, (B, N, C), dtype=jnp.float32)
        params = init_params(kp, C, H, mlp_ratio)
        prep = prepare(params, num_heads=H, shift_size=shift, batch=B, tokens=N)
        y = jax.block_until_ready(swin_block_forward(x, prep))
        assert y.shape == (B, N, C)
        y_ref = swin_block_reference(x, params, num_heads=H, shift_size=shift)
        err = float(jnp.max(jnp.abs(y - y_ref)))
        assert err < tol, f"kernel/reference mismatch: max|diff|={err}"

    # original tiny config (parity with the previous version)
    _check(B=2, N=8, C=32, H=4, shift=2)
    # batched, lane-dense config: 256-row matmul tiles, 2 pipelined grid steps
    _check(B=64, N=8, C=128, H=4, shift=2)
    print("KERNEL_OK")
</pallas_src>

<mosaic_0001>
module attributes {stable_mosaic.version = 11 : i64} {
  func.func @_swin_block_kernel(%arg0: i32, %arg1: memref<16x32xf32, #tpu.memory_space<vmem>>, %arg2: memref<16x1xf32, #tpu.memory_space<vmem>>, %arg3: memref<1x32xf32, #tpu.memory_space<vmem>>, %arg4: memref<1x32xf32, #tpu.memory_space<vmem>>, %arg5: memref<32x32xbf16, #tpu.memory_space<vmem>>, %arg6: memref<1x32xf32, #tpu.memory_space<vmem>>, %arg7: memref<32x32xbf16, #tpu.memory_space<vmem>>, %arg8: memref<1x32xf32, #tpu.memory_space<vmem>>, %arg9: memref<32x32xbf16, #tpu.memory_space<vmem>>, %arg10: memref<1x32xf32, #tpu.memory_space<vmem>>, %arg11: memref<32x32xbf16, #tpu.memory_space<vmem>>, %arg12: memref<1x32xf32, #tpu.memory_space<vmem>>, %arg13: memref<1x32xf32, #tpu.memory_space<vmem>>, %arg14: memref<1x32xf32, #tpu.memory_space<vmem>>, %arg15: memref<32x128xbf16, #tpu.memory_space<vmem>>, %arg16: memref<1x128xf32, #tpu.memory_space<vmem>>, %arg17: memref<128x32xbf16, #tpu.memory_space<vmem>>, %arg18: memref<1x32xf32, #tpu.memory_space<vmem>>, %arg19: memref<32x128xbf16, #tpu.memory_space<vmem>>, %arg20: memref<128x16xf32, #tpu.memory_space<vmem>>, %arg21: memref<4x16xf32, #tpu.memory_space<vmem>>, %arg22: memref<16x4xf32, #tpu.memory_space<vmem>>, %arg23: memref<16x128xbf16, #tpu.memory_space<vmem>>, %arg24: memref<128x32xbf16, #tpu.memory_space<vmem>>, %arg25: memref<16x32xf32, #tpu.memory_space<vmem>>, %arg26: memref<16x64xbf16, #tpu.memory_space<vmem>>, %arg27: memref<16x32xf32, #tpu.memory_space<vmem>>) attributes {dimension_semantics = [#tpu.dimension_semantics<parallel>], iteration_bounds = array<i64: 1>, scalar_prefetch = 0 : i64, scratch_operands = 0 : i64, tpu.core_type = #tpu.core_type<tc>, window_params = [{transform_indices = @transform_0, window_bounds = array<i64: 16, 32>}, {pipeline_mode = #tpu.pipeline_mode<synchronous>, transform_indices = @transform_1, window_bounds = array<i64: 16, 1>}, {pipeline_mode = #tpu.pipeline_mode<synchronous>, transform_indices = @transform_2, window_bounds = array<i64: 1, 32>}, {pipeline_mode = #tpu.pipeline_mode<synchronous>, transform_indices = @transform_3, window_bounds = array<i64: 1, 32>}, {pipeline_mode = #tpu.pipeline_mode<synchronous>, transform_indices = @transform_4, window_bounds = array<i64: 32, 32>}, {pipeline_mode = #tpu.pipeline_mode<synchronous>, transform_indices = @transform_5, window_bounds = array<i64: 1, 32>}, {pipeline_mode = #tpu.pipeline_mode<synchronous>, transform_indices = @transform_6, window_bounds = array<i64: 32, 32>}, {pipeline_mode = #tpu.pipeline_mode<synchronous>, transform_indices = @transform_7, window_bounds = array<i64: 1, 32>}, {pipeline_mode = #tpu.pipeline_mode<synchronous>, transform_indices = @transform_8, window_bounds = array<i64: 32, 32>}, {pipeline_mode = #tpu.pipeline_mode<synchronous>, transform_indices = @transform_9, window_bounds = array<i64: 1, 32>}, {pipeline_mode = #tpu.pipeline_mode<synchronous>, transform_indices = @transform_10, window_bounds = array<i64: 32, 32>}, {pipeline_mode = #tpu.pipeline_mode<synchronous>, transform_indices = @transform_11, window_bounds = array<i64: 1, 32>}, {pipeline_mode = #tpu.pipeline_mode<synchronous>, transform_indices = @transform_12, window_bounds = array<i64: 1, 32>}, {pipeline_mode = #tpu.pipeline_mode<synchronous>, transform_indices = @transform_13, window_bounds = array<i64: 1, 32>}, {pipeline_mode = #tpu.pipeline_mode<synchronous>, transform_indices = @transform_14, window_bounds = array<i64: 32, 128>}, {pipeline_mode = #tpu.pipeline_mode<synchronous>, transform_indices = @transform_15, window_bounds = array<i64: 1, 128>}, {pipeline_mode = #tpu.pipeline_mode<synchronous>, transform_indices = @transform_16, window_bounds = array<i64: 128, 32>}, {pipeline_mode = #tpu.pipeline_mode<synchronous>, transform_indices = @transform_17, window_bounds = array<i64: 1, 32>}, {pipeline_mode = #tpu.pipeline_mode<synchronous>, transform_indices = @transform_18, window_bounds = array<i64: 32, 128>}, {pipeline_mode = #tpu.pipeline_mode<synchronous>, transform_indices = @transform_19, window_bounds = array<i64: 128, 16>}, {pipeline_mode = #tpu.pipeline_mode<synchronous>, transform_indices = @transform_20, window_bounds = array<i64: 4, 16>}, {pipeline_mode = #tpu.pipeline_mode<synchronous>, transform_indices = @transform_21, window_bounds = array<i64: 16, 4>}, {pipeline_mode = #tpu.pipeline_mode<synchronous>, transform_indices = @transform_22, window_bounds = array<i64: 16, 128>}, {pipeline_mode = #tpu.pipeline_mode<synchronous>, transform_indices = @transform_23, window_bounds = array<i64: 128, 32>}, {pipeline_mode = #tpu.pipeline_mode<synchronous>, transform_indices = @transform_24, window_bounds = array<i64: 16, 32>}, {pipeline_mode = #tpu.pipeline_mode<synchronous>, transform_indices = @transform_25, window_bounds = array<i64: 16, 64>}, {transform_indices = @transform_26, window_bounds = array<i64: 16, 32>}]} {
    %c0 = arith.constant 0 : index
    %c0_0 = arith.constant 0 : index
    %0 = vector.load %arg1[%c0, %c0_0] : memref<16x32xf32, #tpu.memory_space<vmem>>, vector<16x32xf32>
    %1 = vector.extract_strided_slice %0 {offsets = [2, 0], sizes = [14, 32], strides = [1, 1]} : vector<16x32xf32> to vector<14x32xf32>
    %2 = vector.extract_strided_slice %0 {offsets = [0, 0], sizes = [2, 32], strides = [1, 1]} : vector<16x32xf32> to vector<2x32xf32>
    %3 = tpu.concatenate %1, %2 in 0 : vector<14x32xf32>, vector<2x32xf32> -> vector<16x32xf32>
    %4 = vector.extract_strided_slice %0 {offsets = [10, 0], sizes = [6, 32], strides = [1, 1]} : vector<16x32xf32> to vector<6x32xf32>
    %5 = vector.extract_strided_slice %0 {offsets = [0, 0], sizes = [10, 32], strides = [1, 1]} : vector<16x32xf32> to vector<10x32xf32>
    %6 = tpu.concatenate %4, %5 in 0 : vector<6x32xf32>, vector<10x32xf32> -> vector<16x32xf32>
    %c0_1 = arith.constant 0 : index
    %c0_2 = arith.constant 0 : index
    %7 = vector.load %arg2[%c0_1, %c0_2] : memref<16x1xf32, #tpu.memory_space<vmem>>, vector<16x1xf32>
    %8 = vector.broadcast %7 : vector<16x1xf32> to vector<16x32xf32>
    %9 = arith.mulf %8, %3 : vector<16x32xf32>
    %cst = arith.constant 1.000000e+00 : f32
    %10 = vector.broadcast %cst : f32 to vector<16x1xf32>
    %11 = arith.subf %10, %7 : vector<16x1xf32>
    %12 = vector.broadcast %11 : vector<16x1xf32> to vector<16x32xf32>
    %13 = arith.mulf %12, %6 : vector<16x32xf32>
    %14 = arith.addf %9, %13 : vector<16x32xf32>
    %c0_3 = arith.constant 0 : index
    %c0_4 = arith.constant 0 : index
    %15 = vector.load %arg3[%c0_3, %c0_4] : memref<1x32xf32, #tpu.memory_space<vmem>>, vector<1x32xf32>
    %c0_5 = arith.constant 0 : index
    %c0_6 = arith.constant 0 : index
    %16 = vector.load %arg4[%c0_5, %c0_6] : memref<1x32xf32, #tpu.memory_space<vmem>>, vector<1x32xf32>
    %cst_7 = arith.constant dense<0.000000e+00> : vector<16xf32>
    %17 = vector.multi_reduction <add>, %14, %cst_7 [1] : vector<16x32xf32> to vector<16xf32>
    %18 = vector.shape_cast %17 : vector<16xf32> to vector<16x1xf32>
    %cst_8 = arith.constant 3.200000e+01 : f32
    %19 = vector.broadcast %cst_8 : f32 to vector<16x1xf32>
    %20 = arith.divf %18, %19 : vector<16x1xf32>
    %21 = vector.broadcast %20 : vector<16x1xf32> to vector<16x32xf32>
    %22 = arith.subf %14, %21 : vector<16x32xf32>
    %23 = arith.mulf %22, %22 : vector<16x32xf32>
    %cst_9 = arith.constant dense<0.000000e+00> : vector<16xf32>
    %24 = vector.multi_reduction <add>, %23, %cst_9 [1] : vector<16x32xf32> to vector<16xf32>
    %25 = vector.shape_cast %24 : vector<16xf32> to vector<16x1xf32>
    %cst_10 = arith.constant 3.200000e+01 : f32
    %26 = vector.broadcast %cst_10 : f32 to vector<16x1xf32>
    %27 = arith.divf %25, %26 : vector<16x1xf32>
    %28 = vector.broadcast %20 : vector<16x1xf32> to vector<16x32xf32>
    %29 = arith.subf %14, %28 : vector<16x32xf32>
    %cst_11 = arith.constant 9.99999974E-6 : f32
    %30 = vector.broadcast %cst_11 : f32 to vector<16x1xf32>
    %31 = arith.addf %27, %30 : vector<16x1xf32>
    %32 = math.rsqrt %31 : vector<16x1xf32>
    %33 = vector.broadcast %32 : vector<16x1xf32> to vector<16x32xf32>
    %34 = arith.mulf %29, %33 : vector<16x32xf32>
    %35 = vector.broadcast %15 : vector<1x32xf32> to vector<16x32xf32>
    %36 = arith.mulf %34, %35 : vector<16x32xf32>
    %37 = vector.broadcast %16 : vector<1x32xf32> to vector<16x32xf32>
    %38 = arith.addf %36, %37 : vector<16x32xf32>
    %39 = arith.truncf %38 : vector<16x32xf32> to vector<16x32xbf16>
    %c0_12 = arith.constant 0 : index
    %c0_13 = arith.constant 0 : index
    %40 = vector.load %arg5[%c0_12, %c0_13] : memref<32x32xbf16, #tpu.memory_space<vmem>>, vector<32x32xbf16>
    %cst_14 = arith.constant dense<0.000000e+00> : vector<16x32xf32>
    %41 = tpu.matmul %39, %40, %cst_14 {dimension_numbers = #tpu.dot_dimension_numbers<[1], [0], [0], [1], [0, 0, 1, 1], [], []>} : vector<16x32xbf16>, vector<32x32xbf16>, vector<16x32xf32> -> vector<16x32xf32>
    %c0_15 = arith.constant 0 : index
    %c0_16 = arith.constant 0 : index
    %42 = vector.load %arg6[%c0_15, %c0_16] : memref<1x32xf32, #tpu.memory_space<vmem>>, vector<1x32xf32>
    %43 = vector.broadcast %42 : vector<1x32xf32> to vector<16x32xf32>
    %44 = arith.addf %41, %43 : vector<16x32xf32>
    %c0_17 = arith.constant 0 : index
    %c0_18 = arith.constant 0 : index
    %45 = vector.load %arg7[%c0_17, %c0_18] : memref<32x32xbf16, #tpu.memory_space<vmem>>, vector<32x32xbf16>
    %cst_19 = arith.constant dense<0.000000e+00> : vector<16x32xf32>
    %46 = tpu.matmul %39, %45, %cst_19 {dimension_numbers = #tpu.dot_dimension_numbers<[1], [0], [0], [1], [0, 0, 1, 1], [], []>} : vector<16x32xbf16>, vector<32x32xbf16>, vector<16x32xf32> -> vector<16x32xf32>
    %c0_20 = arith.constant 0 : index
    %c0_21 = arith.constant 0 : index
    %47 = vector.load %arg8[%c0_20, %c0_21] : memref<1x32xf32, #tpu.memory_space<vmem>>, vector<1x32xf32>
    %48 = vector.broadcast %47 : vector<1x32xf32> to vector<16x32xf32>
    %49 = arith.addf %46, %48 : vector<16x32xf32>
    %c0_22 = arith.constant 0 : index
    %c0_23 = arith.constant 0 : index
    %50 = vector.load %arg9[%c0_22, %c0_23] : memref<32x32xbf16, #tpu.memory_space<vmem>>, vector<32x32xbf16>
    %cst_24 = arith.constant dense<0.000000e+00> : vector<16x32xf32>
    %51 = tpu.matmul %39, %50, %cst_24 {dimension_numbers = #tpu.dot_dimension_numbers<[1], [0], [0], [1], [0, 0, 1, 1], [], []>} : vector<16x32xbf16>, vector<32x32xbf16>, vector<16x32xf32> -> vector<16x32xf32>
    %c0_25 = arith.constant 0 : index
    %c0_26 = arith.constant 0 : index
    %52 = vector.load %arg10[%c0_25, %c0_26] : memref<1x32xf32, #tpu.memory_space<vmem>>, vector<1x32xf32>
    %53 = vector.broadcast %52 : vector<1x32xf32> to vector<16x32xf32>
    %54 = arith.addf %51, %53 : vector<16x32xf32>
    %55 = arith.truncf %44 : vector<16x32xf32> to vector<16x32xbf16>
    %c0_27 = arith.constant 0 : index
    %c0_28 = arith.constant 0 : index
    %56 = vector.load %arg19[%c0_27, %c0_28] : memref<32x128xbf16, #tpu.memory_space<vmem>>, vector<32x128xbf16>
    %cst_29 = arith.constant dense<0.000000e+00> : vector<16x128xf32>
    %57 = tpu.matmul %55, %56, %cst_29 {dimension_numbers = #tpu.dot_dimension_numbers<[1], [0], [0], [1], [0, 0, 1, 1], [], []>} : vector<16x32xbf16>, vector<32x128xbf16>, vector<16x128xf32> -> vector<16x128xf32>
    %58 = tpu.concatenate %49, %49, %49, %49 in 1 : vector<16x32xf32>, vector<16x32xf32>, vector<16x32xf32>, vector<16x32xf32> -> vector<16x128xf32>
    %59 = arith.mulf %57, %58 : vector<16x128xf32>
    %c0_30 = arith.constant 0 : index
    %c0_31 = arith.constant 0 : index
    %60 = vector.load %arg20[%c0_30, %c0_31] : memref<128x16xf32, #tpu.memory_space<vmem>>, vector<128x16xf32>
    %cst_32 = arith.constant dense<0.000000e+00> : vector<16x16xf32>
    %61 = tpu.matmul %59, %60, %cst_32 {dimension_numbers = #tpu.dot_dimension_numbers<[1], [0], [0], [1], [0, 0, 1, 1], [], []>} : vector<16x128xf32>, vector<128x16xf32>, vector<16x16xf32> -> vector<16x16xf32>
    %62 = vector.extract_strided_slice %61 {offsets = [0, 0], sizes = [16, 4], strides = [1, 1]} : vector<16x16xf32> to vector<16x4xf32>
    %cst_33 = arith.constant dense<0xFF800000> : vector<16xf32>
    %63 = vector.multi_reduction <maximumf>, %62, %cst_33 [1] : vector<16x4xf32> to vector<16xf32>
    %64 = vector.shape_cast %63 : vector<16xf32> to vector<16x1xf32>
    %65 = vector.extract_strided_slice %61 {offsets = [0, 4], sizes = [16, 4], strides = [1, 1]} : vector<16x16xf32> to vector<16x4xf32>
    %cst_34 = arith.constant dense<0xFF800000> : vector<16xf32>
    %66 = vector.multi_reduction <maximumf>, %65, %cst_34 [1] : vector<16x4xf32> to vector<16xf32>
    %67 = vector.shape_cast %66 : vector<16xf32> to vector<16x1xf32>
    %68 = vector.extract_strided_slice %61 {offsets = [0, 8], sizes = [16, 4], strides = [1, 1]} : vector<16x16xf32> to vector<16x4xf32>
    %cst_35 = arith.constant dense<0xFF800000> : vector<16xf32>
    %69 = vector.multi_reduction <maximumf>, %68, %cst_35 [1] : vector<16x4xf32> to vector<16xf32>
    %70 = vector.shape_cast %69 : vector<16xf32> to vector<16x1xf32>
    %71 = vector.extract_strided_slice %61 {offsets = [0, 12], sizes = [16, 4], strides = [1, 1]} : vector<16x16xf32> to vector<16x4xf32>
    %cst_36 = arith.constant dense<0xFF800000> : vector<16xf32>
    %72 = vector.multi_reduction <maximumf>, %71, %cst_36 [1] : vector<16x4xf32> to vector<16xf32>
    %73 = vector.shape_cast %72 : vector<16xf32> to vector<16x1xf32>
    %74 = tpu.concatenate %64, %67, %70, %73 in 1 : vector<16x1xf32>, vector<16x1xf32>, vector<16x1xf32>, vector<16x1xf32> -> vector<16x4xf32>
    %c0_37 = arith.constant 0 : index
    %c0_38 = arith.constant 0 : index
    %75 = vector.load %arg21[%c0_37, %c0_38] : memref<4x16xf32, #tpu.memory_space<vmem>>, vector<4x16xf32>
    %cst_39 = arith.constant dense<0.000000e+00> : vector<16x16xf32>
    %76 = tpu.matmul %74, %75, %cst_39 {dimension_numbers = #tpu.dot_dimension_numbers<[1], [0], [0], [1], [0, 0, 1, 1], [], []>} : vector<16x4xf32>, vector<4x16xf32>, vector<16x16xf32> -> vector<16x16xf32>
    %77 = arith.subf %61, %76 : vector<16x16xf32>
    %78 = math.exp %77 : vector<16x16xf32>
    %c0_40 = arith.constant 0 : index
    %c0_41 = arith.constant 0 : index
    %79 = vector.load %arg22[%c0_40, %c0_41] : memref<16x4xf32, #tpu.memory_space<vmem>>, vector<16x4xf32>
    %cst_42 = arith.constant dense<0.000000e+00> : vector<16x4xf32>
    %80 = tpu.matmul %78, %79, %cst_42 {dimension_numbers = #tpu.dot_dimension_numbers<[1], [0], [0], [1], [0, 0, 1, 1], [], []>} : vector<16x16xf32>, vector<16x4xf32>, vector<16x4xf32> -> vector<16x4xf32>
    %81 = tpu.reciprocal %80 {approx = true} : vector<16x4xf32> -> vector<16x4xf32>
    %c0_43 = arith.constant 0 : index
    %c0_44 = arith.constant 0 : index
    %82 = vector.load %arg21[%c0_43, %c0_44] : memref<4x16xf32, #tpu.memory_space<vmem>>, vector<4x16xf32>
    %cst_45 = arith.constant dense<0.000000e+00> : vector<16x16xf32>
    %83 = tpu.matmul %81, %82, %cst_45 {dimension_numbers = #tpu.dot_dimension_numbers<[1], [0], [0], [1], [0, 0, 1, 1], [], []>} : vector<16x4xf32>, vector<4x16xf32>, vector<16x16xf32> -> vector<16x16xf32>
    %84 = arith.mulf %78, %83 : vector<16x16xf32>
    %85 = arith.truncf %84 : vector<16x16xf32> to vector<16x16xbf16>
    %c0_46 = arith.constant 0 : index
    %c0_47 = arith.constant 0 : index
    %86 = vector.load %arg23[%c0_46, %c0_47] : memref<16x128xbf16, #tpu.memory_space<vmem>>, vector<16x128xbf16>
    %cst_48 = arith.constant dense<0.000000e+00> : vector<16x128xf32>
    %87 = tpu.matmul %85, %86, %cst_48 {dimension_numbers = #tpu.dot_dimension_numbers<[1], [0], [0], [1], [0, 0, 1, 1], [], []>} : vector<16x16xbf16>, vector<16x128xbf16>, vector<16x128xf32> -> vector<16x128xf32>
    %88 = tpu.concatenate %54, %54, %54, %54 in 1 : vector<16x32xf32>, vector<16x32xf32>, vector<16x32xf32>, vector<16x32xf32> -> vector<16x128xf32>
    %89 = arith.mulf %87, %88 : vector<16x128xf32>
    %90 = arith.truncf %89 : vector<16x128xf32> to vector<16x128xbf16>
    %c0_49 = arith.constant 0 : index
    %c0_50 = arith.constant 0 : index
    %91 = vector.load %arg24[%c0_49, %c0_50] : memref<128x32xbf16, #tpu.memory_space<vmem>>, vector<128x32xbf16>
    %cst_51 = arith.constant dense<0.000000e+00> : vector<16x32xf32>
    %92 = tpu.matmul %90, %91, %cst_51 {dimension_numbers = #tpu.dot_dimension_numbers<[1], [0], [0], [1], [0, 0, 1, 1], [], []>} : vector<16x128xbf16>, vector<128x32xbf16>, vector<16x32xf32> -> vector<16x32xf32>
    %c0_52 = arith.constant 0 : index
    %c0_53 = arith.constant 0 : index
    %93 = vector.load %arg25[%c0_52, %c0_53] : memref<16x32xf32, #tpu.memory_space<vmem>>, vector<16x32xf32>
    %94 = vector.extract_strided_slice %92 {offsets = [0, 0], sizes = [16, 8], strides = [1, 1]} : vector<16x32xf32> to vector<16x8xf32>
    %95 = tpu.concatenate %94, %94, %94, %94 in 1 : vector<16x8xf32>, vector<16x8xf32>, vector<16x8xf32>, vector<16x8xf32> -> vector<16x32xf32>
    %96 = arith.mulf %95, %93 : vector<16x32xf32>
    %97 = vector.extract_strided_slice %92 {offsets = [0, 8], sizes = [16, 8], strides = [1, 1]} : vector<16x32xf32> to vector<16x8xf32>
    %98 = tpu.concatenate %97, %97, %97, %97 in 1 : vector<16x8xf32>, vector<16x8xf32>, vector<16x8xf32>, vector<16x8xf32> -> vector<16x32xf32>
    %99 = arith.mulf %98, %93 : vector<16x32xf32>
    %100 = vector.extract_strided_slice %92 {offsets = [0, 16], sizes = [16, 8], strides = [1, 1]} : vector<16x32xf32> to vector<16x8xf32>
    %101 = tpu.concatenate %100, %100, %100, %100 in 1 : vector<16x8xf32>, vector<16x8xf32>, vector<16x8xf32>, vector<16x8xf32> -> vector<16x32xf32>
    %102 = arith.mulf %101, %93 : vector<16x32xf32>
    %103 = vector.extract_strided_slice %92 {offsets = [0, 24], sizes = [16, 8], strides = [1, 1]} : vector<16x32xf32> to vector<16x8xf32>
    %104 = tpu.concatenate %103, %103, %103, %103 in 1 : vector<16x8xf32>, vector<16x8xf32>, vector<16x8xf32>, vector<16x8xf32> -> vector<16x32xf32>
    %105 = arith.mulf %104, %93 : vector<16x32xf32>
    %106 = tpu.concatenate %96, %99, %102, %105 in 0 : vector<16x32xf32>, vector<16x32xf32>, vector<16x32xf32>, vector<16x32xf32> -> vector<64x32xf32>
    %c0_54 = arith.constant 0 : index
    %c0_55 = arith.constant 0 : index
    %107 = vector.load %arg26[%c0_54, %c0_55] : memref<16x64xbf16, #tpu.memory_space<vmem>>, vector<16x64xbf16>
    %108 = arith.truncf %106 : vector<64x32xf32> to vector<64x32xbf16>
    %cst_56 = arith.constant dense<0.000000e+00> : vector<16x32xf32>
    %109 = tpu.matmul %107, %108, %cst_56 {dimension_numbers = #tpu.dot_dimension_numbers<[1], [0], [0], [1], [0, 0, 1, 1], [], []>} : vector<16x64xbf16>, vector<64x32xbf16>, vector<16x32xf32> -> vector<16x32xf32>
    %110 = arith.truncf %109 : vector<16x32xf32> to vector<16x32xbf16>
    %c0_57 = arith.constant 0 : index
    %c0_58 = arith.constant 0 : index
    %111 = vector.load %arg11[%c0_57, %c0_58] : memref<32x32xbf16, #tpu.memory_space<vmem>>, vector<32x32xbf16>
    %cst_59 = arith.constant dense<0.000000e+00> : vector<16x32xf32>
    %112 = tpu.matmul %110, %111, %cst_59 {dimension_numbers = #tpu.dot_dimension_numbers<[1], [0], [0], [1], [0, 0, 1, 1], [], []>} : vector<16x32xbf16>, vector<32x32xbf16>, vector<16x32xf32> -> vector<16x32xf32>
    %c0_60 = arith.constant 0 : index
    %c0_61 = arith.constant 0 : index
    %113 = vector.load %arg12[%c0_60, %c0_61] : memref<1x32xf32, #tpu.memory_space<vmem>>, vector<1x32xf32>
    %114 = vector.broadcast %113 : vector<1x32xf32> to vector<16x32xf32>
    %115 = arith.addf %112, %114 : vector<16x32xf32>
    %116 = arith.addf %115, %38 : vector<16x32xf32>
    %c0_62 = arith.constant 0 : index
    %c0_63 = arith.constant 0 : index
    %117 = vector.load %arg13[%c0_62, %c0_63] : memref<1x32xf32, #tpu.memory_space<vmem>>, vector<1x32xf32>
    %c0_64 = arith.constant 0 : index
    %c0_65 = arith.constant 0 : index
    %118 = vector.load %arg14[%c0_64, %c0_65] : memref<1x32xf32, #tpu.memory_space<vmem>>, vector<1x32xf32>
    %cst_66 = arith.constant dense<0.000000e+00> : vector<16xf32>
    %119 = vector.multi_reduction <add>, %116, %cst_66 [1] : vector<16x32xf32> to vector<16xf32>
    %120 = vector.shape_cast %119 : vector<16xf32> to vector<16x1xf32>
    %cst_67 = arith.constant 3.200000e+01 : f32
    %121 = vector.broadcast %cst_67 : f32 to vector<16x1xf32>
    %122 = arith.divf %120, %121 : vector<16x1xf32>
    %123 = vector.broadcast %122 : vector<16x1xf32> to vector<16x32xf32>
    %124 = arith.subf %116, %123 : vector<16x32xf32>
    %125 = arith.mulf %124, %124 : vector<16x32xf32>
    %cst_68 = arith.constant dense<0.000000e+00> : vector<16xf32>
    %126 = vector.multi_reduction <add>, %125, %cst_68 [1] : vector<16x32xf32> to vector<16xf32>
    %127 = vector.shape_cast %126 : vector<16xf32> to vector<16x1xf32>
    %cst_69 = arith.constant 3.200000e+01 : f32
    %128 = vector.broadcast %cst_69 : f32 to vector<16x1xf32>
    %129 = arith.divf %127, %128 : vector<16x1xf32>
    %130 = vector.broadcast %122 : vector<16x1xf32> to vector<16x32xf32>
    %131 = arith.subf %116, %130 : vector<16x32xf32>
    %cst_70 = arith.constant 9.99999974E-6 : f32
    %132 = vector.broadcast %cst_70 : f32 to vector<16x1xf32>
    %133 = arith.addf %129, %132 : vector<16x1xf32>
    %134 = math.rsqrt %133 : vector<16x1xf32>
    %135 = vector.broadcast %134 : vector<16x1xf32> to vector<16x32xf32>
    %136 = arith.mulf %131, %135 : vector<16x32xf32>
    %137 = vector.broadcast %117 : vector<1x32xf32> to vector<16x32xf32>
    %138 = arith.mulf %136, %137 : vector<16x32xf32>
    %139 = vector.broadcast %118 : vector<1x32xf32> to vector<16x32xf32>
    %140 = arith.addf %138, %139 : vector<16x32xf32>
    %141 = arith.truncf %140 : vector<16x32xf32> to vector<16x32xbf16>
    %c0_71 = arith.constant 0 : index
    %c0_72 = arith.constant 0 : index
    %142 = vector.load %arg15[%c0_71, %c0_72] : memref<32x128xbf16, #tpu.memory_space<vmem>>, vector<32x128xbf16>
    %cst_73 = arith.constant dense<0.000000e+00> : vector<16x128xf32>
    %143 = tpu.matmul %141, %142, %cst_73 {dimension_numbers = #tpu.dot_dimension_numbers<[1], [0], [0], [1], [0, 0, 1, 1], [], []>} : vector<16x32xbf16>, vector<32x128xbf16>, vector<16x128xf32> -> vector<16x128xf32>
    %c0_74 = arith.constant 0 : index
    %c0_75 = arith.constant 0 : index
    %144 = vector.load %arg16[%c0_74, %c0_75] : memref<1x128xf32, #tpu.memory_space<vmem>>, vector<1x128xf32>
    %145 = vector.broadcast %144 : vector<1x128xf32> to vector<16x128xf32>
    %146 = arith.addf %143, %145 : vector<16x128xf32>
    %cst_76 = arith.constant 5.000000e-01 : f32
    %147 = vector.broadcast %cst_76 : f32 to vector<16x128xf32>
    %148 = arith.mulf %147, %146 : vector<16x128xf32>
    %cst_77 = arith.constant 0.707106769 : f32
    %149 = vector.broadcast %cst_77 : f32 to vector<16x128xf32>
    %150 = arith.mulf %146, %149 : vector<16x128xf32>
    %151 = math.erf %150 : vector<16x128xf32>
    %cst_78 = arith.constant 1.000000e+00 : f32
    %152 = vector.broadcast %cst_78 : f32 to vector<16x128xf32>
    %153 = arith.addf %152, %151 : vector<16x128xf32>
    %154 = arith.mulf %148, %153 : vector<16x128xf32>
    %155 = arith.truncf %154 : vector<16x128xf32> to vector<16x128xbf16>
    %c0_79 = arith.constant 0 : index
    %c0_80 = arith.constant 0 : index
    %156 = vector.load %arg17[%c0_79, %c0_80] : memref<128x32xbf16, #tpu.memory_space<vmem>>, vector<128x32xbf16>
    %cst_81 = arith.constant dense<0.000000e+00> : vector<16x32xf32>
    %157 = tpu.matmul %155, %156, %cst_81 {dimension_numbers = #tpu.dot_dimension_numbers<[1], [0], [0], [1], [0, 0, 1, 1], [], []>} : vector<16x128xbf16>, vector<128x32xbf16>, vector<16x32xf32> -> vector<16x32xf32>
    %c0_82 = arith.constant 0 : index
    %c0_83 = arith.constant 0 : index
    %158 = vector.load %arg18[%c0_82, %c0_83] : memref<1x32xf32, #tpu.memory_space<vmem>>, vector<1x32xf32>
    %159 = vector.broadcast %158 : vector<1x32xf32> to vector<16x32xf32>
    %160 = arith.addf %157, %159 : vector<16x32xf32>
    %161 = arith.addf %160, %140 : vector<16x32xf32>
    %c0_84 = arith.constant 0 : index
    %c0_85 = arith.constant 0 : index
    %162 = vector.load %arg27[%c0_84, %c0_85] : memref<16x32xf32, #tpu.memory_space<vmem>>, vector<16x32xf32>
    tpu.vector_store %arg27[%c0_84, %c0_85], %161 {strides = array<i32>} : memref<16x32xf32, #tpu.memory_space<vmem>>, vector<16x32xf32>,
    return
  }
  func.func @transform_0(%arg0: i32) -> (i32, i32) {
    %c0_i32 = arith.constant 0 : i32
    %c0_i32_0 = arith.constant 0 : i32
    return %arg0, %c0_i32 : i32, i32
  }
  func.func @transform_1(%arg0: i32) -> (i32, i32) {
    %c0_i32 = arith.constant 0 : i32
    %c0_i32_0 = arith.constant 0 : i32
    %c0_i32_1 = arith.constant 0 : i32
    return %c0_i32, %c0_i32_0 : i32, i32
  }
  func.func @transform_2(%arg0: i32) -> (i32, i32) {
    %c0_i32 = arith.constant 0 : i32
    %c0_i32_0 = arith.constant 0 : i32
    %c0_i32_1 = arith.constant 0 : i32
    return %c0_i32, %c0_i32_0 : i32, i32
  }
  func.func @transform_3(%arg0: i32) -> (i32, i32) {
    %c0_i32 = arith.constant 0 : i32
    %c0_i32_0 = arith.constant 0 : i32
    %c0_i32_1 = arith.constant 0 : i32
    return %c0_i32, %c0_i32_0 : i32, i32
  }
  func.func @transform_4(%arg0: i32) -> (i32, i32) {
    %c0_i32 = arith.constant 0 : i32
    %c0_i32_0 = arith.constant 0 : i32
    %c0_i32_1 = arith.constant 0 : i32
    return %c0_i32, %c0_i32_0 : i32, i32
  }
  func.func @transform_5(%arg0: i32) -> (i32, i32) {
    %c0_i32 = arith.constant 0 : i32
    %c0_i32_0 = arith.constant 0 : i32
    %c0_i32_1 = arith.constant 0 : i32
    return %c0_i32, %c0_i32_0 : i32, i32
  }
  func.func @transform_6(%arg0: i32) -> (i32, i32) {
    %c0_i32 = arith.constant 0 : i32
    %c0_i32_0 = arith.constant 0 : i32
    %c0_i32_1 = arith.constant 0 : i32
    return %c0_i32, %c0_i32_0 : i32, i32
  }
  func.func @transform_7(%arg0: i32) -> (i32, i32) {
    %c0_i32 = arith.constant 0 : i32
    %c0_i32_0 = arith.constant 0 : i32
    %c0_i32_1 = arith.constant 0 : i32
    return %c0_i32, %c0_i32_0 : i32, i32
  }
  func.func @transform_8(%arg0: i32) -> (i32, i32) {
    %c0_i32 = arith.constant 0 : i32
    %c0_i32_0 = arith.constant 0 : i32
    %c0_i32_1 = arith.constant 0 : i32
    return %c0_i32, %c0_i32_0 : i32, i32
  }
  func.func @transform_9(%arg0: i32) -> (i32, i32) {
    %c0_i32 = arith.constant 0 : i32
    %c0_i32_0 = arith.constant 0 : i32
    %c0_i32_1 = arith.constant 0 : i32
    return %c0_i32, %c0_i32_0 : i32, i32
  }
  func.func @transform_10(%arg0: i32) -> (i32, i32) {
    %c0_i32 = arith.constant 0 : i32
    %c0_i32_0 = arith.constant 0 : i32
    %c0_i32_1 = arith.constant 0 : i32
    return %c0_i32, %c0_i32_0 : i32, i32
  }
  func.func @transform_11(%arg0: i32) -> (i32, i32) {
    %c0_i32 = arith.constant 0 : i32
    %c0_i32_0 = arith.constant 0 : i32
    %c0_i32_1 = arith.constant 0 : i32
    return %c0_i32, %c0_i32_0 : i32, i32
  }
  func.func @transform_12(%arg0: i32) -> (i32, i32) {
    %c0_i32 = arith.constant 0 : i32
    %c0_i32_0 = arith.constant 0 : i32
    %c0_i32_1 = arith.constant 0 : i32
    return %c0_i32, %c0_i32_0 : i32, i32
  }
  func.func @transform_13(%arg0: i32) -> (i32, i32) {
    %c0_i32 = arith.constant 0 : i32
    %c0_i32_0 = arith.constant 0 : i32
    %c0_i32_1 = arith.constant 0 : i32
    return %c0_i32, %c0_i32_0 : i32, i32
  }
  func.func @transform_14(%arg0: i32) -> (i32, i32) {
    %c0_i32 = arith.constant 0 : i32
    %c0_i32_0 = arith.constant 0 : i32
    %c0_i32_1 = arith.constant 0 : i32
    return %c0_i32, %c0_i32_0 : i32, i32
  }
  func.func @transform_15(%arg0: i32) -> (i32, i32) {
    %c0_i32 = arith.constant 0 : i32
    %c0_i32_0 = arith.constant 0 : i32
    %c0_i32_1 = arith.constant 0 : i32
    return %c0_i32, %c0_i32_0 : i32, i32
  }
  func.func @transform_16(%arg0: i32) -> (i32, i32) {
    %c0_i32 = arith.constant 0 : i32
    %c0_i32_0 = arith.constant 0 : i32
    %c0_i32_1 = arith.constant 0 : i32
    return %c0_i32, %c0_i32_0 : i32, i32
  }
  func.func @transform_17(%arg0: i32) -> (i32, i32) {
    %c0_i32 = arith.constant 0 : i32
    %c0_i32_0 = arith.constant 0 : i32
    %c0_i32_1 = arith.constant 0 : i32
    return %c0_i32, %c0_i32_0 : i32, i32
  }
  func.func @transform_18(%arg0: i32) -> (i32, i32) {
    %c0_i32 = arith.constant 0 : i32
    %c0_i32_0 = arith.constant 0 : i32
    %c0_i32_1 = arith.constant 0 : i32
    return %c0_i32, %c0_i32_0 : i32, i32
  }
  func.func @transform_19(%arg0: i32) -> (i32, i32) {
    %c0_i32 = arith.constant 0 : i32
    %c0_i32_0 = arith.constant 0 : i32
    %c0_i32_1 = arith.constant 0 : i32
    return %c0_i32, %c0_i32_0 : i32, i32
  }
  func.func @transform_20(%arg0: i32) -> (i32, i32) {
    %c0_i32 = arith.constant 0 : i32
    %c0_i32_0 = arith.constant 0 : i32
    %c0_i32_1 = arith.constant 0 : i32
    return %c0_i32, %c0_i32_0 : i32, i32
  }
  func.func @transform_21(%arg0: i32) -> (i32, i32) {
    %c0_i32 = arith.constant 0 : i32
    %c0_i32_0 = arith.constant 0 : i32
    %c0_i32_1 = arith.constant 0 : i32
    return %c0_i32, %c0_i32_0 : i32, i32
  }
  func.func @transform_22(%arg0: i32) -> (i32, i32) {
    %c0_i32 = arith.constant 0 : i32
    %c0_i32_0 = arith.constant 0 : i32
    %c0_i32_1 = arith.constant 0 : i32
    return %c0_i32, %c0_i32_0 : i32, i32
  }
  func.func @transform_23(%arg0: i32) -> (i32, i32) {
    %c0_i32 = arith.constant 0 : i32
    %c0_i32_0 = arith.constant 0 : i32
    %c0_i32_1 = arith.constant 0 : i32
    return %c0_i32, %c0_i32_0 : i32, i32
  }
  func.func @transform_24(%arg0: i32) -> (i32, i32) {
    %c0_i32 = arith.constant 0 : i32
    %c0_i32_0 = arith.constant 0 : i32
    %c0_i32_1 = arith.constant 0 : i32
    return %c0_i32, %c0_i32_0 : i32, i32
  }
  func.func @transform_25(%arg0: i32) -> (i32, i32) {
    %c0_i32 = arith.constant 0 : i32
    %c0_i32_0 = arith.constant 0 : i32
    %c0_i32_1 = arith.constant 0 : i32
    return %c0_i32, %c0_i32_0 : i32, i32
  }
  func.func @transform_26(%arg0: i32) -> (i32, i32) {
    %c0_i32 = arith.constant 0 : i32
    %c0_i32_0 = arith.constant 0 : i32
    return %arg0, %c0_i32 : i32, i32
  }
}

</mosaic_0001>

<bundles_post_ra>
// kernel: tpu_custom_call.1
= control target key start
LH: loop header
LB: loop body
LE: loop exit
PB: predicated region body
PF: predicated region fallthrough
CT: control target
= control target key end

     0   :  { %s2401_s0 = inlined_call_operand.vmem [shape: f32[16,32], index: 0, kind: input, shape index: {}]   ;;  %s2402_s1 = inlined_call_operand.vmem [shape: f32[16,1], index: 1, kind: input, shape index: {}]   ;;  %s2403_s2 = inlined_call_operand.vmem [shape: f32[1,32], index: 2, kind: input, shape index: {}]   ;;  %s2404_s3 = inlined_call_operand.vmem [shape: f32[1,32], index: 3, kind: input, shape index: {}]   ;;  %s2405_s4 = inlined_call_operand.vmem [shape: bf16[32,32], index: 4, kind: input, shape index: {}]   ;;  %s2406_s5 = inlined_call_operand.vmem [shape: f32[1,32], index: 5, kind: input, shape index: {}]   ;;  %s2407_s6 = inlined_call_operand.vmem [shape: bf16[32,32], index: 6, kind: input, shape index: {}]   ;;  %s2408_s7 = inlined_call_operand.vmem [shape: f32[1,32], index: 7, kind: input, shape index: {}]   ;;  %s2409_s8 = inlined_call_operand.vmem [shape: bf16[32,32], index: 8, kind: input, shape index: {}]   ;;  %s2410_s9 = inlined_call_operand.vmem [shape: f32[1,32], index: 9, kind: input, shape index: {}]   ;;  %s2411_s10 = inlined_call_operand.vmem [shape: bf16[32,32], index: 10, kind: input, shape index: {}]   ;;  %s2412_s11 = inlined_call_operand.vmem [shape: f32[1,32], index: 11, kind: input, shape index: {}]   ;;  %s2413_s12 = inlined_call_operand.vmem [shape: f32[1,32], index: 12, kind: input, shape index: {}]   ;;  %s2414_s13 = inlined_call_operand.vmem [shape: f32[1,32], index: 13, kind: input, shape index: {}]   ;;  %s2415_s14 = inlined_call_operand.vmem [shape: bf16[32,128], index: 14, kind: input, shape index: {}]   ;;  %s2416_s15 = inlined_call_operand.vmem [shape: f32[1,128], index: 15, kind: input, shape index: {}]   ;;  %s2417_s16 = inlined_call_operand.vmem [shape: bf16[128,32], index: 16, kind: input, shape index: {}]   ;;  %s2418_s17 = inlined_call_operand.vmem [shape: f32[1,32], index: 17, kind: input, shape index: {}]   ;;  %s2419_s18 = inlined_call_operand.vmem [shape: bf16[32,128], index: 18, kind: input, shape index: {}]   ;;  %s2420_s19 = inlined_call_operand.vmem [shape: f32[128,16], index: 19, kind: input, shape index: {}]   ;;  %s2421_s20 = inlined_call_operand.vmem [shape: f32[4,16], index: 20, kind: input, shape index: {}]   ;;  %s2422_s21 = inlined_call_operand.vmem [shape: f32[16,4], index: 21, kind: input, shape index: {}]   ;;  %s2423_s22 = inlined_call_operand.vmem [shape: bf16[16,128], index: 22, kind: input, shape index: {}]   ;;  %s2424_s23 = inlined_call_operand.vmem [shape: bf16[128,32], index: 23, kind: input, shape index: {}]   ;;  %s2425_s24 = inlined_call_operand.vmem [shape: f32[16,32], index: 24, kind: input, shape index: {}]   ;;  %s2426_s25 = inlined_call_operand.vmem [shape: bf16[16,64], index: 25, kind: input, shape index: {}]   ;;  %s2427_s26 = inlined_call_operand.hbm [shape: f32[16,32], index: 26, kind: output, shape index: {}]  }
   0x1   :  { %2434 = sst [smem:[#allocation5_spill]] %s2401_s0 }
   0x2   :  { %2435 = sst [smem:[#allocation6_spill]] %s2402_s1 }
   0x3   :  { %2436 = sst [smem:[#allocation7_spill]] %s2403_s2 }
   0x4   :  { %2437 = sst [smem:[#allocation8_spill]] %s2404_s3 }
   0x5   :  { %2438 = sst [smem:[#allocation9_spill]] %s2405_s4 }
   0x6   :  { %2439 = sst [smem:[#allocation10_spill]] %s2406_s5 }
   0x7   :  { %2440 = sst [smem:[#allocation11_spill]] %s2407_s6 }
   0x8   :  { %2441 = sst [smem:[#allocation12_spill]] %s2408_s7 }
   0x9   :  { %2442 = sst [smem:[#allocation13_spill]] %s2409_s8 }
   0xa   :  { %2443 = sst [smem:[#allocation14_spill]] %s2410_s9 }
   0xb   :  { %2444 = sst [smem:[#allocation15_spill]] %s2411_s10 }
   0xc   :  { %s2445_s7 = sld [smem:[#allocation6_spill]]  ;;  %v1863_v2 = vmov 0  }
   0xd   :  { %1789 = vset.pattern.permute.xlu0 %v1863_v2  ;;  %1790 = vset.pattern.permute.xlu1 %v1863_v2 }
  0x12   :  { %v97_v0 = vld [vmem:[%s2445_s7] sm:$0xff]  ;;  %v98_v1 = vld [vmem:[%s2445_s7 + $0x8] sm:$0xff] }
  0x13   :  { %v111_v3 = vsub.f32 1.0, %v97_v0  ;;  %101 = vperm.xlu0 %1789, %v97_v0   ;;  %v112_v4 = vsub.f32 1.0, %v98_v1 }
  0x15   :  { %115 = vperm.xlu1 %1790, %v111_v3  }
  0x17   :  { %106 = vperm.xlu0 %1789, %v98_v1  }
  0x19   :  { %120 = vperm.xlu1 %1790, %v112_v4  }
  0x1a   :  { %31 = vsyncpa [#allocation3], 0  ;;  %s2446_s0 = sld [smem:[#allocation5_spill]]  ;;  %vm89_vm0 = vcmask 1045504   ;;  %vm129_vm1 = vcmask 261120   ;;  %v1864_v35 = vmov 0.0  }
  0x1b   :  { %s2447_s10 = sld [smem:[#allocation9_spill]]  ;;  %1617 = vmatprep.subr.bf16.mxu0 %v1864_v35  ;;  %1625 = vmatprep.subr.bf16.mxu1 %v1864_v35  ;;  %vm1865_vm2 = vmmov 0   ;;  %v1797_v57 = vld [vmem:[%s2419_s18 + $0x8] sm:$0xff]   ;;  %v1798_v58 = vld [vmem:[%s2419_s18] sm:$0xff]   ;;  %v475_v63 = vld [vmem:[%s2420_s19 + $0x78] sm:$0xff]  ;;  %s1866_s1 = smov 32  }
  0x1c   :  { %s2448_s27 = sld [smem:[#allocation11_spill]]  ;;  %1621 = vmatprep.mubr.msk.bf16.mxu0 %vm1865_vm2, %v1864_v35  ;;  %1629 = vmatprep.mubr.msk.bf16.mxu1 %vm1865_vm2, %v1864_v35  ;;  %v474_v0 = vld [vmem:[%s2420_s19 + $0x70] sm:$0xff]  ;;  %v473_v4 = vld [vmem:[%s2420_s19 + $0x68] sm:$0xff]  ;;  %s1867_s8 = smov 64   ;;  %vm452_vm3 = vcmask 523264   ;;  %vm455_vm4 = vcmask 785408  }
  0x1d   :  { %s2450_s2 = sld [smem:[#allocation8_spill]]  ;;  %vm551_vm5 = vcmask 31744   ;;  %vm558_vm6 = vcmask 64544   ;;  %vm565_vm7 = vcmask 97344   ;;  %vm572_vm8 = vcmask 130144   ;;  %s1873_s9 = smov 16  }
  0x1e   :  { %s2451_s6 = sld [smem:[#allocation13_spill]]  ;;  %vm595_vm9 = vcmask 1043456   ;;  %vm579_vm10 = vcmask 7168   ;;  %vm585_vm11 = vcmask 23552   ;;  %vm582_vm12 = vcmask 15360   ;;  %s1874_s30 = smov 24  }
  0x1f   :  { %s2453_s18 = sld [smem:[#allocation10_spill]]  ;;  %vm682_vm13 = vcmask 130048   ;;  %vm1058_vm14 = vcmask 64512   ;;  %vm1063_vm15 = vcmask 195584  }
  0x20   :  { %v85_v5 = vld [vmem:[%s2446_s0] sm:$0xff]  ;;  %v86_v6 = vld [vmem:[%s2446_s0 + $0x8] sm:$0xff]  ;;  %s2449_s0 = sld [smem:[#allocation7_spill]] }
  0x21   :  { %v90_v7 = vrot.slane %v85_v5, 2  ;;  %v91_v8 = vrot.slane %v86_v6, 2  ;;  %v1791_v33 = vld [vmem:[%s2447_s10 + $0x8] sm:$0xff]   ;;  %v1793_v36 = vld [vmem:[%s2447_s10] sm:$0xff]   ;;  %s2454_s29 = sld [smem:[#allocation14_spill]] }
  0x22   :  { %v1792_v34 = vld [vmem:[%s2448_s27 + $0x8] sm:$0xff]   ;;  %1618 = vmatpush3.bf16.msra.mxu0 %v1791_v33  ;;  %v1794_v37 = vld [vmem:[%s2448_s27] sm:$0xff]   ;;  %s2455_s3 = sld [smem:[#allocation15_spill]] }
  0x23   :  { %v92_v9 = vsel %vm89_vm0, %v90_v7, %v91_v8  ;;  %v96_v10 = vsel %vm89_vm0, %v91_v8, %v90_v7  ;;  %1626 = vmatpush3.bf16.msra.mxu1 %v1792_v34  ;;  %1619 = vmatprep.subr.bf16.mxu0 %v1864_v35  ;;  %v1491_v50 = vld [vmem:[%s2450_s2] ss:$0 sm:$0xff] }
  0x24   :  { %1627 = vmatprep.subr.bf16.mxu1 %v1864_v35  ;;  %v1795_v54 = vld [vmem:[%s2451_s6 + $0x8] sm:$0xff]   ;;  %v1796_v56 = vld [vmem:[%s2451_s6] sm:$0xff]  }
  0x25   :  { %v1492_v1 = vld [vmem:[%s2453_s18] ss:$0 sm:$0xff] }
  0x26   :  { %1620 = vmatpush3.bf16.msra.mxu0 %v1793_v36  ;;  %v1490_v46 = vld [vmem:[%s2449_s0] ss:$0 sm:$0xff]  ;;  %s2452_s0 = sld [smem:[#allocation12_spill]] }
  0x27   :  { %1628 = vmatpush3.bf16.msra.mxu1 %v1794_v37  ;;  %1633 = vmatprep.subr.bf16.mxu0 %v1864_v35 }
  0x28   :  { %1641 = vmatprep.subr.bf16.mxu1 %v1864_v35 }
  0x2c   :  { %v1496_v59 = vld [vmem:[%s2452_s0] ss:$0 sm:$0xff]  ;;  %s1868_s0 = smov 96  }
  0x8e   :  { %v102_v11 = vpop.permute.xlu0 %101 }
  0x8f   :  { %v109_v12 = vmul.f32 %v102_v11, %v92_v9 }
  0x90   :  { %v116_v13 = vpop.permute.xlu1 %115 }
  0x91   :  { %v123_v14 = vmul.f32 %v116_v13, %v96_v10 }
  0x92   :  { %v107_v15 = vpop.permute.xlu0 %106 }
  0x93   :  { %v125_v16 = vadd.f32 %v123_v14, %v109_v12  ;;  %v110_v17 = vmul.f32 %v107_v15, %v96_v10  ;;  %v472_v12 = vld [vmem:[%s2420_s19 + $0x60] sm:$0xff]  ;;  %v471_v15 = vld [vmem:[%s2420_s19 + $0x58] sm:$0xff] }
  0x94   :  { %v121_v18 = vpop.permute.xlu1 %120 }
  0x95   :  { %v124_v19 = vmul.f32 %v121_v18, %v92_v9  ;;  %v130_v20 = vsel %vm129_vm1, %v125_v16, 0.0 }
  0x96   :  { %131 = vadd.xlane.f32.xlu0 %v130_v20 }
  0x97   :  { %v126_v21 = vadd.f32 %v124_v19, %v110_v17  ;;  %v470_v17 = vld [vmem:[%s2420_s19 + $0x50] sm:$0xff]  ;;  %v469_v19 = vld [vmem:[%s2420_s19 + $0x48] sm:$0xff] }
  0x99   :  { %v133_v22 = vsel %vm129_vm1, %v126_v21, 0.0 }
  0x9a   :  { %134 = vadd.xlane.f32.xlu1 %v133_v22  ;;  %v467_v22 = vld [vmem:[%s2420_s19 + $0x38] sm:$0xff] }
 0x11f   :  { %v132_v23 = vpop.xlane.xlu0 %131 }
 0x120   :  { %v137_v24 = vmul.f32 0.03125, %v132_v23  ;;  %v466_v23 = vld [vmem:[%s2420_s19 + $0x30] sm:$0xff] }
 0x122   :  { %v139_v25 = vsub.f32 %v125_v16, %v137_v24  ;;  %v465_v24 = vld [vmem:[%s2420_s19 + $0x28] sm:$0xff] }
 0x123   :  { %v135_v26 = vpop.xlane.xlu1 %134 }
 0x124   :  { %v138_v27 = vmul.f32 0.03125, %v135_v26  ;;  %v141_v28 = vmul.f32 %v139_v25, %v139_v25  ;;  %v463_v26 = vld [vmem:[%s2420_s19 + $0x18] sm:$0xff] }
 0x126   :  { %v140_v29 = vsub.f32 %v126_v21, %v138_v27  ;;  %v143_v30 = vsel %vm129_vm1, %v141_v28, 0.0  ;;  %v468_v21 = vld [vmem:[%s2420_s19 + $0x40] sm:$0xff]  ;;  %v462_v27 = vld [vmem:[%s2420_s19 + $0x10] sm:$0xff]  ;;  %v461_v28 = vld [vmem:[%s2420_s19 + $0x8] sm:$0xff] }
 0x127   :  { %144 = vadd.xlane.f32.xlu0 %v143_v30 }
 0x128   :  { %v142_v31 = vmul.f32 %v140_v29, %v140_v29 }
 0x12a   :  { %v146_v32 = vsel %vm129_vm1, %v142_v31, 0.0 }
 0x12b   :  { %147 = vadd.xlane.f32.xlu0 %v146_v32 }
 0x1b0   :  { %v145_v38 = vpop.xlane.xlu0 %144 }
 0x1b1   :  { %v149_v39 = vmul.f32 0.03125, %v145_v38 }
 0x1b3   :  { %v151_v40 = vadd.f32 1e-05, %v149_v39 }
 0x1b4   :  { %v148_v41 = vpop.xlane.xlu0 %147 }
 0x1b5   :  { %1821 = vrsqrt.f32 %v151_v40  ;;  %v150_v42 = vmul.f32 0.03125, %v148_v41 }
 0x1b7   :  { %v152_v43 = vadd.f32 1e-05, %v150_v42 }
 0x1b9   :  { %1823 = vrsqrt.f32 %v152_v43 }
 0x1c2   :  { %v1822_v44 = vpop.eup %1821 }
 0x1c3   :  { %v155_v45 = vmul.f32 %v1822_v44, %v139_v25  ;;  %v464_v25 = vld [vmem:[%s2420_s19 + $0x20] sm:$0xff] }
 0x1c5   :  { %v163_v49 = vmul.f32 %v1490_v46, %v155_v45 }
 0x1c6   :  { %v1824_v47 = vpop.eup %1823 }
 0x1c7   :  { %v156_v48 = vmul.f32 %v1824_v47, %v140_v29  ;;  %v2056_v52 = vadd.f32 %v1491_v50, %v163_v49  ;;  %v460_v29 = vld [vmem:[%s2420_s19] sm:$0xff] }
 0x1c9   :  { %v164_v51 = vmul.f32 %v1490_v46, %v156_v48 }
 0x1cb   :  { %v2058_v53 = vadd.f32 %v1491_v50, %v164_v51 }
 0x1cd   :  { %v173_v55 = vpack.c.bf16 %v2058_v53, %v2056_v52 }
 0x1cf   :  { %1622 = vmatmul.mubr.msk.bf16.vlgmr.msra.gmra.mxu0 %vm129_vm1, %v173_v55  ;;  %1630 = vmatmul.mubr.msk.bf16.vlgmr.msra.gmra.mxu1 %vm129_vm1, %v173_v55 }
 0x1d0   :  { %1634 = vmatpush3.bf16.msra.mxu0 %v1795_v54  ;;  %1637 = vmatprep.mubr.msk.bf16.mxu0 %vm1865_vm2, %v1864_v35 }
 0x1d1   :  { %1635 = vmatprep.subr.bf16.mxu0 %v1864_v35  ;;  %1645 = vmatprep.mubr.msk.bf16.mxu1 %vm1865_vm2, %v1864_v35 }
 0x1d2   :  { %1642 = vmatpush3.bf16.msra.mxu1 %v1797_v57 }
 0x1d3   :  { %1643 = vmatprep.subr.bf16.mxu1 %v1864_v35 }
 0x1d4   :  { %1636 = vmatpush3.bf16.msra.mxu0 %v1796_v56 }
 0x1d5   :  { %1649 = vmatprep.subr.mxu0 %v475_v63 }
 0x1d6   :  { %1644 = vmatpush3.bf16.msra.mxu1 %v1798_v58 }
 0x1d7   :  { %1638 = vmatmul.mubr.msk.bf16.vlgmr.msra.gmra.mxu0 %vm129_vm1, %v173_v55 }
 0x1d8   :  { %1650 = vmatpush3.msra.mxu0 %v475_v63 }
 0x1d9   :  { %1651 = vmatprep.subr.mxu0 %v474_v0 }
 0x1da   :  { %1652 = vmatpush3.msra.mxu0 %v474_v0 }
 0x1db   :  { %1653 = vmatprep.subr.mxu0 %v473_v4 }
 0x1dc   :  { %1654 = vmatpush3.msra.mxu0 %v473_v4 }
 0x1dd   :  { %1655 = vmatprep.subr.mxu0 %v472_v12 }
 0x1de   :  { %1656 = vmatpush3.msra.mxu0 %v472_v12 }
 0x1df   :  { %1657 = vmatprep.subr.mxu0 %v471_v15 }
 0x1e0   :  { %1658 = vmatpush3.msra.mxu0 %v471_v15  ;;  %v681_v15 = vld [vmem:[%s2422_s21 + $0x8] sm:$0xff] }
 0x1e1   :  { %1659 = vmatprep.subr.mxu0 %v470_v17 }
 0x1e2   :  { %1660 = vmatpush3.msra.mxu0 %v470_v17 }
 0x1e3   :  { %1661 = vmatprep.subr.mxu0 %v469_v19 }
 0x1e4   :  { %1662 = vmatpush3.msra.mxu0 %v469_v19 }
 0x1e5   :  { %1663 = vmatprep.subr.mxu0 %v468_v21 }
 0x1e6   :  { %1664 = vmatpush3.msra.mxu0 %v468_v21 }
 0x1e7   :  { %1665 = vmatprep.subr.mxu0 %v467_v22 }
 0x1e8   :  { %1666 = vmatpush3.msra.mxu0 %v467_v22 }
 0x1e9   :  { %1667 = vmatprep.subr.mxu0 %v466_v23 }
 0x1ea   :  { %1668 = vmatpush3.msra.mxu0 %v466_v23 }
 0x1eb   :  { %1669 = vmatprep.subr.mxu0 %v465_v24 }
 0x1ec   :  { %1670 = vmatpush3.msra.mxu0 %v465_v24 }
 0x1ed   :  { %1671 = vmatprep.subr.mxu0 %v464_v25 }
 0x1ee   :  { %1672 = vmatpush3.msra.mxu0 %v464_v25 }
 0x1ef   :  { %1673 = vmatprep.subr.mxu0 %v463_v26 }
 0x1f0   :  { %1674 = vmatpush3.msra.mxu0 %v463_v26 }
 0x1f1   :  { %1675 = vmatprep.subr.mxu0 %v462_v27 }
 0x1f2   :  { %1676 = vmatpush3.msra.mxu0 %v462_v27 }
 0x1f3   :  { %1677 = vmatprep.subr.mxu0 %v461_v28 }
 0x1f4   :  { %1678 = vmatpush3.msra.mxu0 %v461_v28 }
 0x1f5   :  { %1679 = vmatprep.subr.mxu0 %v460_v29 }
 0x1f6   :  { %1680 = vmatpush3.msra.mxu0 %v460_v29  ;;  %v1799_v29 = vld [vmem:[%s2423_s22] sm:$0xff]  }
 0x1f7   :  { %1739 = vmatprep.subr.bf16.mxu0 %v1864_v35 }
 0x28f   :  { %v234_v60 = vpop.f32.mrf.mxu0  ;;  %v298_v61 = vpop.f32.mrf.mxu1 }
 0x290   :  { %v2086_v62 = vadd.f32 %v1496_v59, %v298_v61  ;;  %v235_v7 = vadd.f32 %v1492_v1, %v234_v60  ;;  %v588_v61 = vld [vmem:[%s2421_s20] sm:$0xf] }
 0x291   :  { %v1623_v2 = vpop.f32.mrf.mxu0  ;;  %v1631_v3 = vpop.f32.mrf.mxu1  ;;  %1684 = vmatprep.subr.msk.mxu1 %vm595_vm9, %v588_v61 }
 0x292   :  { %432 = vrot.lane.b32.xlu1 %v2086_v62, %s1866_s1 }
 0x293   :  { %v237_v5 = vpop.f32.mrf.mxu0  ;;  %v301_v6 = vpop.f32.mrf.mxu1 }
 0x294   :  { %v238_v8 = vadd.f32 %v1492_v1, %v237_v5  ;;  %v2102_v9 = vadd.f32 %v1496_v59, %v301_v6 }
 0x295   :  { %v1624_v10 = vpop.f32.mrf.mxu0  ;;  %v1632_v11 = vpop.f32.mrf.mxu1 }
 0x296   :  { %v369_v13 = vpack.c.bf16 %v238_v8, %v235_v7  ;;  %438 = vrot.lane.b32.xlu1 %v2086_v62, %s1867_s8  ;;  %434 = vrot.lane.b32.xlu0 %v2102_v9, %s1866_s1 }
 0x297   :  { %v2111_v14 = vpop.f32.mrf.mxu0 }
 0x298   :  { %1646 = vmatmul.mubr.msk.bf16.vlgmr.msra.gmra.mxu1 %vm129_vm1, %v369_v13 }
 0x299   :  { %v1639_v16 = vpop.f32.mrf.mxu0  ;;  %1685 = vmatpush3.msk.msra.mxu1 %vm595_vm9, %v588_v61 }
 0x29a   :  { %440 = vrot.lane.b32.xlu1 %v2102_v9, %s1867_s8  ;;  %444 = vrot.lane.b32.xlu0 %v2086_v62, %s1868_s0  ;;  %v680_v16 = vld [vmem:[%s2422_s21] sm:$0xff]  ;;  %s1872_s21 = smov 8  }
 0x29b   :  { %v2124_v18 = vpop.f32.mrf.mxu0  ;;  %1689 = vmatprep.subr.mxu1 %v681_v15 }
 0x29d   :  { %v1640_v20 = vpop.f32.mrf.mxu0 }
 0x29e   :  { %446 = vrot.lane.b32.xlu1 %v2102_v9, %s1868_s0 }
 0x304   :  { %v433_v30 = vpop.permute.xlu1 %432 }
 0x305   :  { %v450_v36 = vsel %vm129_vm1, %v2086_v62, %v433_v30  ;;  %v1500_v62 = vld [vmem:[%s2454_s29] ss:$0 sm:$0xff] }
 0x306   :  { %v2186_v63 = vadd.f32 %v1500_v62, %v2111_v14  ;;  %v2193_v0 = vadd.f32 %v1500_v62, %v2124_v18 }
 0x308   :  { %v439_v31 = vpop.permute.xlu1 %438  ;;  %v435_v32 = vpop.permute.xlu0 %434 }
 0x309   :  { %v453_v37 = vsel %vm452_vm3, %v450_v36, %v439_v31  ;;  %v451_v42 = vsel %vm129_vm1, %v2102_v9, %v435_v32 }
 0x30c   :  { %v441_v33 = vpop.permute.xlu1 %440  ;;  %v445_v34 = vpop.permute.xlu0 %444 }
 0x30d   :  { %v456_v39 = vsel %vm455_vm4, %v453_v37, %v445_v34  ;;  %v454_v44 = vsel %vm452_vm3, %v451_v42, %v441_v33  ;;  %v1800_v34 = vld [vmem:[%s2424_s23 + $0x38] sm:$0xff]   ;;  %v1801_v37 = vld [vmem:[%s2424_s23 + $0x30] sm:$0xff]   ;;  %v1806_v42 = vld [vmem:[%s2424_s23 + $0x8] sm:$0xff]  }
 0x310   :  { %v447_v40 = vpop.permute.xlu1 %446 }
 0x311   :  { %v457_v46 = vsel %vm455_vm4, %v454_v44, %v447_v40  ;;  %v1804_v40 = vld [vmem:[%s2424_s23 + $0x18] sm:$0xff]  }
 0x358   :  { %v423_v38 = vpop.f32.mrf.mxu1 }
 0x359   :  { %v458_v41 = vmul.f32 %v456_v39, %v423_v38  ;;  %v1802_v38 = vld [vmem:[%s2424_s23 + $0x28] sm:$0xff]   ;;  %v1803_v39 = vld [vmem:[%s2424_s23 + $0x20] sm:$0xff]  }
 0x35a   :  { %v1647_v43 = vpop.f32.mrf.mxu1 }
 0x35b   :  { %1681 = vmatprep.mubr.f32.mxu0 %v458_v41  ;;  %v1805_v41 = vld [vmem:[%s2424_s23 + $0x10] sm:$0xff]   ;;  %v1807_v43 = vld [vmem:[%s2424_s23] sm:$0xff]   ;;  %s1869_s23 = smov 112  }
 0x35c   :  { %v426_v45 = vpop.f32.mrf.mxu1 }
 0x35d   :  { %v459_v47 = vmul.f32 %v457_v46, %v426_v45 }
 0x35e   :  { %v1648_v48 = vpop.f32.mrf.mxu1 }
 0x35f   :  { %1682 = vmatmul.mubr.f32.vlgmr.msra.gmra.mxu0 %v459_v47 }
 0x360   :  { %1743 = vmatprep.mubr.msk.bf16.mxu0 %vm1865_vm2, %v1864_v35 }
 0x41f   :  { %v2169_v49 = vpop.f32.mrf.mxu0 }
 0x420   :  { %v555_v50 = vsel %vm551_vm5, %v2169_v49, -inf  ;;  %v562_v55 = vsel %vm558_vm6, %v2169_v49, -inf  ;;  %v569_v57 = vsel %vm565_vm7, %v2169_v49, -inf  ;;  %v576_v60 = vsel %vm572_vm8, %v2169_v49, -inf }
 0x421   :  { %556 = vmax.xlane.f32.xlu0 %v555_v50  ;;  %v542_v51 = vpop.f32.mrf.mxu0 }
 0x422   :  { %v559_v54 = vsel %vm558_vm6, %v542_v51, -inf  ;;  %v566_v56 = vsel %vm565_vm7, %v542_v51, -inf  ;;  %v573_v58 = vsel %vm572_vm8, %v542_v51, -inf  ;;  %v552_v59 = vsel %vm551_vm5, %v542_v51, -inf }
 0x423   :  { %560 = vmax.xlane.f32.xlu1 %v559_v54 }
 0x425   :  { %563 = vmax.xlane.f32.xlu0 %v562_v55 }
 0x427   :  { %567 = vmax.xlane.f32.xlu1 %v566_v56 }
 0x429   :  { %570 = vmax.xlane.f32.xlu0 %v569_v57 }
 0x42b   :  { %574 = vmax.xlane.f32.xlu1 %v573_v58 }
 0x42d   :  { %553 = vmax.xlane.f32.xlu0 %v552_v59 }
 0x431   :  { %577 = vmax.xlane.f32.xlu0 %v576_v60 }
 0x43c   :  { %904 = vrot.lane.b32.xlu1 %v2186_v63, %s1866_s1 }
 0x440   :  { %910 = vrot.lane.b32.xlu1 %v2186_v63, %s1867_s8 }
 0x444   :  { %912 = vrot.lane.b32.xlu1 %v2193_v0, %s1867_s8  ;;  %s1870_s8 = smov 104  }
 0x447   :  { %906 = vrot.lane.b32.xlu0 %v2193_v0, %s1866_s1 }
 0x448   :  { %918 = vrot.lane.b32.xlu1 %v2193_v0, %s1868_s0 }
 0x44b   :  { %916 = vrot.lane.b32.xlu0 %v2186_v63, %s1868_s0  ;;  %s1871_s0 = smov 120  }
 0x4aa   :  { %v557_v1 = vpop.xlane.xlu0 %556 }
 0x4ac   :  { %v561_v2 = vpop.xlane.xlu1 %560 }
 0x4ae   :  { %v564_v3 = vpop.xlane.xlu0 %563 }
 0x4af   :  { %v581_v10 = vsel %vm579_vm10, %v557_v1, %v564_v3 }
 0x4b0   :  { %v568_v4 = vpop.xlane.xlu1 %567 }
 0x4b2   :  { %v571_v5 = vpop.xlane.xlu0 %570 }
 0x4b3   :  { %v584_v12 = vsel %vm582_vm12, %v581_v10, %v571_v5 }
 0x4b4   :  { %v575_v8 = vpop.xlane.xlu1 %574 }
 0x4b6   :  { %v554_v6 = vpop.xlane.xlu0 %553 }
 0x4b7   :  { %v580_v7 = vsel %vm579_vm10, %v554_v6, %v561_v2 }
 0x4b8   :  { %v583_v9 = vsel %vm582_vm12, %v580_v7, %v568_v4  ;;  %v905_v44 = vpop.permute.xlu1 %904 }
 0x4b9   :  { %v586_v11 = vsel %vm585_vm11, %v583_v9, %v575_v8  ;;  %v922_v54 = vsel %vm129_vm1, %v2186_v63, %v905_v44 }
 0x4ba   :  { %1686 = vmatprep.mubr.msk.f32.mxu1 %vm551_vm5, %v586_v11  ;;  %v578_v13 = vpop.xlane.xlu0 %577 }
 0x4bb   :  { %v587_v14 = vsel %vm585_vm11, %v584_v12, %v578_v13 }
 0x4bc   :  { %1687 = vmatmul.mubr.msk.f32.vlgmr.msra.gmra.mxu1 %vm551_vm5, %v587_v14  ;;  %v911_v45 = vpop.permute.xlu1 %910 }
 0x4bd   :  { %1690 = vmatpush3.msra.mxu1 %v681_v15  ;;  %v924_v56 = vsel %vm452_vm3, %v922_v54, %v911_v45  ;;  %v1036_v15 = vld [vmem:[%s2425_s24] sm:$0xff] }
 0x4be   :  { %1691 = vmatprep.subr.mxu1 %v680_v16  ;;  %v907_v46 = vpop.permute.xlu0 %906 }
 0x4bf   :  { %1692 = vmatpush3.msra.mxu1 %v680_v16  ;;  %v923_v48 = vsel %vm129_vm1, %v2193_v0, %v907_v46 }
 0x4c0   :  { %1696 = vmatprep.subr.msk.mxu1 %vm595_vm9, %v588_v61  ;;  %v913_v47 = vpop.permute.xlu1 %912 }
 0x4c1   :  { %v925_v57 = vsel %vm452_vm3, %v923_v48, %v913_v47 }
 0x4c2   :  { %v917_v50 = vpop.permute.xlu0 %916 }
 0x4c3   :  { %v926_v58 = vsel %vm455_vm4, %v924_v56, %v917_v50 }
 0x57c   :  { %v1688_v17 = vpop.f32.mrf.mxu1 }
 0x57d   :  { %v675_v18 = vsub.f32 %v2169_v49, %v1688_v17 }
 0x57e   :  { %v665_v19 = vpop.f32.mrf.mxu1 }
 0x57f   :  { %v674_v20 = vsub.f32 %v542_v51, %v665_v19  ;;  %v678_v21 = vmul.f32 1.442695, %v675_v18  ;;  %v919_v51 = vpop.permute.xlu1 %918  ;;  %v1037_v18 = vld [vmem:[%s2425_s24 + $0x8] sm:$0xff] }
 0x580   :  { %v927_v60 = vsel %vm455_vm4, %v925_v57, %v919_v51 }
 0x581   :  { %v676_v22 = vmul.f32 1.442695, %v674_v20 }
 0x583   :  { %1825 = vpow2.f32 %v676_v22 }
 0x584   :  { %1827 = vpow2.f32 %v678_v21 }
 0x590   :  { %v1826_v23 = vpop.eup %1825 }
 0x591   :  { %v1828_v24 = vpop.eup %1827  ;;  %1693 = vmatprep.mubr.msk.f32.mxu1 %vm682_vm13, %v1826_v23 }
 0x592   :  { %1694 = vmatmul.mubr.msk.f32.vlgmr.msra.gmra.mxu1 %vm682_vm13, %v1828_v24 }
 0x593   :  { %1697 = vmatpush3.msk.msra.mxu1 %vm595_vm9, %v588_v61 }
 0x594   :  { %1701 = vmatprep.subr.bf16.mxu1 %v1864_v35 }
 0x652   :  { %v1695_v25 = vpop.f32.mrf.mxu1 }
 0x654   :  { %v755_v26 = vpop.f32.mrf.mxu1 }
 0x655   :  { %1829 = vrcp.f32 %v755_v26 }
 0x656   :  { %1831 = vrcp.f32 %v1695_v25 }
 0x662   :  { %v1830_v27 = vpop.eup %1829 }
 0x663   :  { %v1832_v28 = vpop.eup %1831  ;;  %1698 = vmatprep.mubr.msk.f32.mxu1 %vm551_vm5, %v1830_v27 }
 0x664   :  { %1699 = vmatmul.mubr.msk.f32.vlgmr.msra.gmra.mxu1 %vm551_vm5, %v1832_v28 }
 0x665   :  { %1703 = vmatprep.mubr.msk.bf16.mxu1 %vm1865_vm2, %v1864_v35  ;;  %1702 = vmatpush3.bf16.msra.mxu1 %v1799_v29 }
 0x666   :  { %1707 = vmatprep.subr.bf16.mxu1 %v1864_v35 }
 0x724   :  { %v1700_v30 = vpop.f32.mrf.mxu1 }
 0x725   :  { %v848_v32 = vmul.f32 %v1828_v24, %v1700_v30 }
 0x726   :  { %v838_v31 = vpop.f32.mrf.mxu1 }
 0x727   :  { %v847_v33 = vmul.f32 %v1826_v23, %v838_v31 }
 0x729   :  { %v849_v36 = vpack.c.bf16 %v848_v32, %v847_v33 }
 0x72b   :  { %1704 = vmatmul.mubr.msk.bf16.vlgmr.msra.gmra.mxu1 %vm682_vm13, %v849_v36 }
 0x72c   :  { %1708 = vmatpush3.bf16.msra.mxu1 %v1800_v34  ;;  %1723 = vmatprep.mubr.msk.bf16.mxu1 %vm1865_vm2, %v1864_v35 }
 0x72d   :  { %1709 = vmatprep.subr.bf16.mxu1 %v1864_v35 }
 0x730   :  { %1710 = vmatpush3.bf16.msra.mxu1 %v1801_v37 }
 0x731   :  { %1711 = vmatprep.subr.bf16.mxu1 %v1864_v35 }
 0x734   :  { %1712 = vmatpush3.bf16.msra.mxu1 %v1802_v38 }
 0x735   :  { %1713 = vmatprep.subr.bf16.mxu1 %v1864_v35 }
 0x738   :  { %1714 = vmatpush3.bf16.msra.mxu1 %v1803_v39 }
 0x739   :  { %1715 = vmatprep.subr.bf16.mxu1 %v1864_v35 }
 0x73c   :  { %1716 = vmatpush3.bf16.msra.mxu1 %v1804_v40 }
 0x73d   :  { %1717 = vmatprep.subr.bf16.mxu1 %v1864_v35 }
 0x740   :  { %1718 = vmatpush3.bf16.msra.mxu1 %v1805_v41 }
 0x741   :  { %1719 = vmatprep.subr.bf16.mxu1 %v1864_v35 }
 0x744   :  { %1720 = vmatpush3.bf16.msra.mxu1 %v1806_v42 }
 0x745   :  { %1721 = vmatprep.subr.bf16.mxu1 %v1864_v35 }
 0x748   :  { %1722 = vmatpush3.bf16.msra.mxu1 %v1807_v43 }
 0x749   :  { %1727 = vmatprep.subr.bf16.mxu1 %v1864_v35 }
 0x7eb   :  { %v895_v49 = vpop.f32.mrf.mxu1 }
 0x7ec   :  { %v928_v61 = vmul.f32 %v926_v58, %v895_v49  ;;  %v1808_v58 = vld [vmem:[%s2426_s25] sm:$0xff]  }
 0x7ed   :  { %v1705_v55 = vpop.f32.mrf.mxu1 }
 0x7ef   :  { %v898_v59 = vpop.f32.mrf.mxu1 }
 0x7f0   :  { %v929_v62 = vmul.f32 %v927_v60, %v898_v59  ;;  %v1809_v59 = vld [vmem:[%s2455_s3 + $0x8] sm:$0xff]   ;;  %v1810_v60 = vld [vmem:[%s2455_s3] sm:$0xff]  }
 0x7f1   :  { %v1706_v1 = vpop.f32.mrf.mxu1  ;;  %1740 = vmatpush3.bf16.msra.mxu0 %v1809_v59 }
 0x7f2   :  { %v930_v0 = vpack.c.bf16 %v929_v62, %v928_v61  ;;  %1741 = vmatprep.subr.bf16.mxu0 %v1864_v35 }
 0x7f4   :  { %1724 = vmatmul.mubr.bf16.vlgmr.msra.gmra.mxu1 %v930_v0 }
 0x7f5   :  { %1735 = vmatprep.mubr.msk.bf16.mxu1 %vm1865_vm2, %v1864_v35  ;;  %1742 = vmatpush3.bf16.msra.mxu0 %v1810_v60 }
 0x7f6   :  { %1755 = vmatprep.subr.bf16.mxu0 %v1864_v35 }
 0x8b4   :  { %v1029_v2 = vpop.f32.mrf.mxu1 }
 0x8b5   :  { %1082 = vrot.lane.b32.xlu0 %v1029_v2, %s1869_s23 }
 0x8b6   :  { %v1725_v63 = vpop.f32.mrf.mxu1 }
 0x8b7   :  { %v1527_v63 = vld [vmem:[%s2412_s11] ss:$0 sm:$0xff]  ;;  %s1875_s11 = smov [#allocation2]  }
 0x8b8   :  { %v2270_v3 = vpop.f32.mrf.mxu1  ;;  %s1479_s4 = sshll.u32 %s1875_s11, 4  ;;  %s1480_s4 = int_to_ptr.vmem [resolvable:$true] %s1479_s4 }
 0x8b9   :  { %1096 = vrot.lane.b32.xlu0 %v1029_v2, %s1870_s8  ;;  %1084 = vrot.lane.b32.xlu1 %v2270_v3, %s1869_s23  ;;  %s1841_s29 = scalar_lea.vmem %s1480_s4, 256  ;;  %p1846_p1 = scmp.lt.s32.totalorder %s1480_s4, %s1480_s4 }
 0x8ba   :  { %v1726_v4 = vpop.f32.mrf.mxu1  ;;  %p1842_p0 = scmp.ne.s32.totalorder %s1480_s4, %s1841_s29  ;;  %p1847_p2 = scmp.lt.s32.totalorder %s1841_s29, %s1841_s29 }
 0x8bc   :  { %p1848_p3 = por %p1847_p2, %p1846_p1 }
 0x8bd   :  { %1068 = vrot.lane.b32.xlu0 %v1029_v2, %s1871_s0  ;;  %1098 = vrot.lane.b32.xlu1 %v2270_v3, %s1870_s8 }
 0x8be   :  { %p1849_p4 = pnand %p1848_p3, %p1842_p0 }
 0x8c1   :  { %1040 = vrot.lane.b32.xlu0 %v1029_v2, %s1872_s21  ;;  %1070 = vrot.lane.b32.xlu1 %v2270_v3, %s1871_s0 }
 0x8c5   :  { %1046 = vrot.lane.b32.xlu0 %v1029_v2, %s1873_s9  ;;  %1042 = vrot.lane.b32.xlu1 %v2270_v3, %s1872_s21 }
 0x8c9   :  { %1052 = vrot.lane.b32.xlu0 %v1029_v2, %s1874_s30  ;;  %1048 = vrot.lane.b32.xlu1 %v2270_v3, %s1873_s9 }
 0x8cd   :  { %1054 = vrot.lane.b32.xlu1 %v2270_v3, %s1874_s30 }
 0x927   :  { %v1083_v5 = vpop.permute.xlu0 %1082 }
 0x92b   :  { %v1097_v6 = vpop.permute.xlu0 %1096  ;;  %v1085_v7 = vpop.permute.xlu1 %1084 }
 0x92c   :  { %v1102_v10 = vsel %vm1058_vm14, %v1097_v6, %v1083_v5 }
 0x92f   :  { %v1069_v8 = vpop.permute.xlu0 %1068  ;;  %v1099_v9 = vpop.permute.xlu1 %1098 }
 0x930   :  { %v1104_v11 = vsel %vm682_vm13, %v1102_v10, %v1069_v8  ;;  %v1088_v12 = vsel %vm1058_vm14, %v1083_v5, %v1069_v8  ;;  %v1103_v17 = vsel %vm1058_vm14, %v1099_v9, %v1085_v7  ;;  %v1074_v28 = vsel %vm1058_vm14, %v1069_v8, %v1029_v2 }
 0x931   :  { %v1106_v16 = vsel %vm1063_vm15, %v1104_v11, %v1029_v2  ;;  %v1090_v21 = vsel %vm682_vm13, %v1088_v12, %v1029_v2 }
 0x932   :  { %v1108_v23 = vmul.f32 %v1106_v16, %v1036_v15 }
 0x933   :  { %v1041_v13 = vpop.permute.xlu0 %1040  ;;  %v1071_v14 = vpop.permute.xlu1 %1070 }
 0x934   :  { %v1089_v19 = vsel %vm1058_vm14, %v1085_v7, %v1071_v14  ;;  %v1105_v20 = vsel %vm682_vm13, %v1103_v17, %v1071_v14  ;;  %v1092_v24 = vsel %vm1063_vm15, %v1090_v21, %v1041_v13  ;;  %v1076_v30 = vsel %vm682_vm13, %v1074_v28, %v1041_v13 }
 0x935   :  { %v1107_v22 = vsel %vm1063_vm15, %v1105_v20, %v2270_v3  ;;  %v1091_v29 = vsel %vm682_vm13, %v1089_v19, %v2270_v3  ;;  %v1094_v33 = vmul.f32 %v1092_v24, %v1036_v15  ;;  %v1075_v34 = vsel %vm1058_vm14, %v1071_v14, %v2270_v3 }
 0x936   :  { %v1109_v25 = vmul.f32 %v1107_v22, %v1037_v18  ;;  %v1059_v41 = vsel %vm1058_vm14, %v1029_v2, %v1041_v13  ;;  %v1812_v22 = vld [vmem:[%s2415_s14] sm:$0xff]  }
 0x937   :  { %v1047_v26 = vpop.permute.xlu0 %1046  ;;  %v1043_v27 = vpop.permute.xlu1 %1042 }
 0x938   :  { %v1093_v31 = vsel %vm1063_vm15, %v1091_v29, %v1043_v27  ;;  %v1115_v32 = vpack.c.bf16 %v1109_v25, %v1108_v23  ;;  %v1078_v36 = vsel %vm1063_vm15, %v1076_v30, %v1047_v26  ;;  %v1077_v38 = vsel %vm682_vm13, %v1075_v34, %v1043_v27  ;;  %v1813_v23 = vld [vmem:[%s2417_s16 + $0x38] sm:$0xff]  }
 0x939   :  { %v1095_v37 = vmul.f32 %v1093_v31, %v1037_v18  ;;  %v1061_v44 = vsel %vm682_vm13, %v1059_v41, %v1047_v26  ;;  %v1080_v45 = vmul.f32 %v1078_v36, %v1036_v15  ;;  %v1060_v47 = vsel %vm1058_vm14, %v2270_v3, %v1043_v27 }
 0x93a   :  { %1728 = vmatpush3.bf16.msra.mxu1 %v1115_v32  ;;  %v1531_v32 = vld [vmem:[%s2413_s12] ss:$0 sm:$0xff] }
 0x93b   :  { %v1053_v39 = vpop.permute.xlu0 %1052  ;;  %v1049_v40 = vpop.permute.xlu1 %1048  ;;  %v1114_v42 = vpack.c.bf16 %v1095_v37, %v1094_v33  ;;  %1729 = vmatprep.subr.bf16.mxu1 %v1864_v35  ;;  %v1532_v37 = vld [vmem:[%s2414_s13] ss:$0 sm:$0xff] }
 0x93c   :  { %v1079_v43 = vsel %vm1063_vm15, %v1077_v38, %v1049_v40  ;;  %v1064_v48 = vsel %vm1063_vm15, %v1061_v44, %v1053_v39  ;;  %v1062_v49 = vsel %vm682_vm13, %v1060_v47, %v1049_v40  ;;  %v1816_v44 = vld [vmem:[%s2417_s16 + $0x20] sm:$0xff]   ;;  %v1819_v47 = vld [vmem:[%s2417_s16 + $0x8] sm:$0xff]  }
 0x93d   :  { %v1081_v46 = vmul.f32 %v1079_v43, %v1037_v18  ;;  %v1066_v55 = vmul.f32 %v1064_v48, %v1036_v15  ;;  %v1815_v43 = vld [vmem:[%s2417_s16 + $0x28] sm:$0xff]   ;;  %v1820_v48 = vld [vmem:[%s2417_s16] sm:$0xff]  }
 0x93e   :  { %1730 = vmatpush3.bf16.msra.mxu1 %v1114_v42  ;;  %v1814_v42 = vld [vmem:[%s2417_s16 + $0x30] sm:$0xff]  }
 0x93f   :  { %v1113_v50 = vpack.c.bf16 %v1081_v46, %v1080_v45  ;;  %v1055_v51 = vpop.permute.xlu1 %1054  ;;  %1731 = vmatprep.subr.bf16.mxu1 %v1864_v35  ;;  %v1817_v45 = vld [vmem:[%s2417_s16 + $0x18] sm:$0xff]   ;;  %v1818_v46 = vld [vmem:[%s2417_s16 + $0x10] sm:$0xff]  }
 0x940   :  { %v1065_v54 = vsel %vm1063_vm15, %v1062_v49, %v1055_v51  ;;  %v1533_v49 = vld [vmem:[%s2416_s15] ss:$0 sm:$0xff] }
 0x941   :  { %v1067_v56 = vmul.f32 %v1065_v54, %v1037_v18 }
 0x942   :  { %1732 = vmatpush3.bf16.msra.mxu1 %v1113_v50 }
 0x943   :  { %v1112_v57 = vpack.c.bf16 %v1067_v56, %v1066_v55  ;;  %1733 = vmatprep.subr.bf16.mxu1 %v1864_v35 }
 0x946   :  { %1734 = vmatpush3.bf16.msra.mxu1 %v1112_v57 }
 0x947   :  { %1747 = vmatprep.subr.bf16.mxu1 %v1864_v35 }
 0x949   :  { %1736 = vmatmul.mubr.msk.bf16.vlgmr.msra.gmra.mxu1 %vm452_vm3, %v1808_v58 }
 0x94a   :  { %1751 = vmatprep.mubr.msk.bf16.mxu1 %vm1865_vm2, %v1864_v35 }
 0xa09   :  { %v1158_v61 = vpop.f32.mrf.mxu1 }
 0xa0b   :  { %v1737_v62 = vpop.f32.mrf.mxu1 }
 0xa0d   :  { %v1161_v1 = vpop.f32.mrf.mxu1 }
 0xa0e   :  { %v1165_v0 = vpack.c.bf16 %v1161_v1, %v1158_v61 }
 0xa0f   :  { %v1738_v2 = vpop.f32.mrf.mxu1 }
 0xa10   :  { %1744 = vmatmul.mubr.msk.bf16.vlgmr.msra.gmra.mxu0 %vm129_vm1, %v1165_v0 }
 0xa11   :  { %1771 = vmatprep.mubr.msk.bf16.mxu0 %vm1865_vm2, %v1864_v35  ;;  %1756 = vmatpush3.bf16.msra.mxu0 %v1813_v23 }
 0xa12   :  { %1757 = vmatprep.subr.bf16.mxu0 %v1864_v35 }
 0xa15   :  { %1758 = vmatpush3.bf16.msra.mxu0 %v1814_v42 }
 0xa16   :  { %1759 = vmatprep.subr.bf16.mxu0 %v1864_v35 }
 0xa19   :  { %1760 = vmatpush3.bf16.msra.mxu0 %v1815_v43 }
 0xa1a   :  { %1761 = vmatprep.subr.bf16.mxu0 %v1864_v35 }
 0xa1d   :  { %1762 = vmatpush3.bf16.msra.mxu0 %v1816_v44 }
 0xa1e   :  { %1763 = vmatprep.subr.bf16.mxu0 %v1864_v35 }
 0xa21   :  { %1764 = vmatpush3.bf16.msra.mxu0 %v1817_v45 }
 0xa22   :  { %1765 = vmatprep.subr.bf16.mxu0 %v1864_v35 }
 0xa25   :  { %1766 = vmatpush3.bf16.msra.mxu0 %v1818_v46 }
 0xa26   :  { %1767 = vmatprep.subr.bf16.mxu0 %v1864_v35 }
 0xa29   :  { %1768 = vmatpush3.bf16.msra.mxu0 %v1819_v47 }
 0xa2a   :  { %1769 = vmatprep.subr.bf16.mxu0 %v1864_v35 }
 0xa2d   :  { %1770 = vmatpush3.bf16.msra.mxu0 %v1820_v48 }
 0xad0   :  { %v1226_v3 = vpop.f32.mrf.mxu0 }
 0xad1   :  { %v1227_v4 = vadd.f32 %v1527_v63, %v1226_v3 }
 0xad2   :  { %v1745_v5 = vpop.f32.mrf.mxu0 }
 0xad3   :  { %v1233_v6 = vadd.f32 %v1227_v4, %v2056_v52  ;;  %v1537_v4 = vld [vmem:[%s2418_s17] ss:$0 sm:$0xff] }
 0xad4   :  { %v1229_v7 = vpop.f32.mrf.mxu0 }
 0xad5   :  { %v1230_v8 = vadd.f32 %v1527_v63, %v1229_v7  ;;  %v1237_v9 = vsel %vm129_vm1, %v1233_v6, 0.0 }
 0xad6   :  { %1238 = vadd.xlane.f32.xlu0 %v1237_v9  ;;  %v1746_v10 = vpop.f32.mrf.mxu0 }
 0xad7   :  { %v1234_v11 = vadd.f32 %v1230_v8, %v2058_v53  ;;  %v1811_v53 = vld [vmem:[%s2415_s14 + $0x8] sm:$0xff]  }
 0xad8   :  { %1748 = vmatpush3.bf16.msra.mxu1 %v1811_v53 }
 0xad9   :  { %v1240_v12 = vsel %vm129_vm1, %v1234_v11, 0.0  ;;  %1749 = vmatprep.subr.bf16.mxu1 %v1864_v35 }
 0xada   :  { %1241 = vadd.xlane.f32.xlu1 %v1240_v12 }
 0xadc   :  { %1750 = vmatpush3.bf16.msra.mxu1 %v1812_v22 }
 0xb5f   :  { %v1239_v13 = vpop.xlane.xlu0 %1238 }
 0xb60   :  { %v1243_v14 = vmul.f32 0.03125, %v1239_v13 }
 0xb62   :  { %v1245_v15 = vsub.f32 %v1233_v6, %v1243_v14 }
 0xb63   :  { %v1242_v16 = vpop.xlane.xlu1 %1241 }
 0xb64   :  { %v1244_v17 = vmul.f32 0.03125, %v1242_v16  ;;  %v1247_v18 = vmul.f32 %v1245_v15, %v1245_v15 }
 0xb66   :  { %v1246_v19 = vsub.f32 %v1234_v11, %v1244_v17  ;;  %v1249_v52 = vsel %vm129_vm1, %v1247_v18, 0.0 }
 0xb67   :  { %1250 = vadd.xlane.f32.xlu0 %v1249_v52 }
 0xb68   :  { %v1248_v20 = vmul.f32 %v1246_v19, %v1246_v19 }
 0xb6a   :  { %v1252_v21 = vsel %vm129_vm1, %v1248_v20, 0.0 }
 0xb6b   :  { %1253 = vadd.xlane.f32.xlu0 %v1252_v21 }
 0xbf0   :  { %v1251_v24 = vpop.xlane.xlu0 %1250 }
 0xbf1   :  { %v1255_v25 = vmul.f32 0.03125, %v1251_v24 }
 0xbf3   :  { %v1257_v26 = vadd.f32 1e-05, %v1255_v25 }
 0xbf4   :  { %v1254_v27 = vpop.xlane.xlu0 %1253 }
 0xbf5   :  { %1833 = vrsqrt.f32 %v1257_v26  ;;  %v1256_v28 = vmul.f32 0.03125, %v1254_v27 }
 0xbf7   :  { %v1258_v29 = vadd.f32 1e-05, %v1256_v28 }
 0xbf9   :  { %1835 = vrsqrt.f32 %v1258_v29 }
 0xc02   :  { %v1834_v30 = vpop.eup %1833 }
 0xc03   :  { %v1261_v31 = vmul.f32 %v1834_v30, %v1245_v15 }
 0xc05   :  { %v1269_v36 = vmul.f32 %v1531_v32, %v1261_v31 }
 0xc06   :  { %v1836_v33 = vpop.eup %1835 }
 0xc07   :  { %v1262_v34 = vmul.f32 %v1836_v33, %v1246_v19  ;;  %v1277_v39 = vadd.f32 %v1532_v37, %v1269_v36 }
 0xc09   :  { %v1270_v38 = vmul.f32 %v1531_v32, %v1262_v34 }
 0xc0b   :  { %v1278_v40 = vadd.f32 %v1532_v37, %v1270_v38 }
 0xc0d   :  { %v1279_v41 = vpack.c.bf16 %v1278_v40, %v1277_v39 }
 0xc0f   :  { %1752 = vmatmul.mubr.msk.bf16.vlgmr.msra.gmra.mxu1 %vm129_vm1, %v1279_v41 }
 0xccf   :  { %v1340_v50 = vpop.f32.mrf.mxu1 }
 0xcd0   :  { %v1341_v51 = vadd.f32 %v1533_v49, %v1340_v50 }
 0xcd1   :  { %v1753_v54 = vpop.f32.mrf.mxu1 }
 0xcd2   :  { %v1349_v55 = vmul.f32 0.70710677, %v1341_v51  ;;  %v1347_v62 = vmul.f32 0.5, %v1341_v51 }
 0xcd3   :  { %v1343_v56 = vpop.f32.mrf.mxu1 }
 0xcd4   :  { %1837 = verf.f32 %v1349_v55  ;;  %v1344_v57 = vadd.f32 %v1533_v49, %v1343_v56 }
 0xcd5   :  { %v1754_v58 = vpop.f32.mrf.mxu1 }
 0xcd6   :  { %v1350_v59 = vmul.f32 0.70710677, %v1344_v57  ;;  %v1348_v1 = vmul.f32 0.5, %v1344_v57 }
 0xcd8   :  { %1839 = verf.f32 %v1350_v59 }
 0xce1   :  { %v1838_v35 = vpop.eup %1837 }
 0xce2   :  { %v1353_v60 = vadd.f32 1.0, %v1838_v35 }
 0xce4   :  { %v1355_v2 = vmul.f32 %v1353_v60, %v1347_v62 }
 0xce5   :  { %v1840_v61 = vpop.eup %1839 }
 0xce6   :  { %v1354_v0 = vadd.f32 1.0, %v1840_v61 }
 0xce8   :  { %v1356_v63 = vmul.f32 %v1354_v0, %v1348_v1 }
 0xcea   :  { %v1357_v3 = vpack.c.bf16 %v1356_v63, %v1355_v2 }
 0xcec   :  { %1772 = vmatmul.mubr.bf16.vlgmr.msra.gmra.mxu0 %v1357_v3 }
 0xdac   :  { %v1463_v5 = vpop.f32.mrf.mxu0 }
 0xdad   :  { %v1464_v6 = vadd.f32 %v1537_v4, %v1463_v5 }
 0xdae   :  { %v1773_v7 = vpop.f32.mrf.mxu0 }
 0xdaf   :  { %v1470_v8 = vadd.f32 %v1464_v6, %v1277_v39 }
 0xdb0   :  { %v1466_v9 = vpop.f32.mrf.mxu0 }
 0xdb1   :  { %1472 = vst.msk [vmem:[#allocation2] sm:$0xff] %vm129_vm1, %v1470_v8  ;;  %v1467_v10 = vadd.f32 %v1537_v4, %v1466_v9 }
 0xdb2   :  { %v1774_v11 = vpop.f32.mrf.mxu0 }
 0xdb3   :  { %v1471_v12 = vadd.f32 %v1467_v10, %v1278_v40 }
 0xdb5   :  { %1473 = vst.msk [vmem:[#allocation2 + $0x8] sm:$0xff] %vm129_vm1, %v1471_v12 }
 0xdb6   :  { %1852 = shalt.err (!%p1849_p4)
}
 0xdb7   :  { %s1876_s17 = smov 128  }
 0xdb8   :  { %1485 = dma.vmem_to_hbm [thread:$0]  %s1480_s4, 256, %s2427_s26, [#allocation3], %s1876_s17, %s1876_s17, %s1872_s21  }
 0xdb9   :  { %1861 = dma.done.wait [#allocation3], 256  }
 0xdba   :  { %1862 = vsyncadd [#allocation3], 4294967040 }
 0xdbb   :  { %1489 = vsyncpa [#allocation3], 1 }

</bundles_post_ra>
